<compile_context>
chip_gen: v6e
topology: v6e:2x2x1
jax: 0.10.0
libtpu: 0.0.40
codegen_flags: <defaults>
</compile_context>

<pallas_src>
import jax
import jax.numpy as jnp
from jax import lax
from jax.experimental import pallas as pl
from jax.experimental.pallas import tpu as pltpu


def bottleneck_kernel(x_ref, w1_ref, w2_ref, w3_ref, bias_ref, o_ref, mid_ref):
    # x_ref   : (1, H, W, Cin)      bf16 input (whole image; resident across row blocks)
    # w1_ref  : (Cin, P)            bf16 1x1 conv weights (BN1 scale folded in)
    # w2_ref  : (9, P, P)           bf16 3x3 conv weights, [ky*3+kx, cin, cout] (BN2 scale folded)
    # w3_ref  : (P, Cout)           bf16 1x1 expansion weights (BN3 scale folded)
    # bias_ref: (3, Cout)           f32 packed biases: row0=b1 (first P lanes), row1=b2, row2=b3
    # o_ref   : (1, Th, W, Cout)    bf16 output row block
    # mid_ref : (H+2, W+2, P)       bf16 VMEM scratch: zero-bordered conv1 output (per image)
    H, W, Cin = x_ref.shape[1], x_ref.shape[2], x_ref.shape[3]
    P = w1_ref.shape[1]
    Cout = w3_ref.shape[1]
    Th = o_ref.shape[1]
    r = pl.program_id(1)

    # ---- conv1 (1x1) + bias + ReLU: once per image, result persists in scratch.
    # Safe under megacore: only the batch axis is "parallel", so every core that
    # owns image b executes its r==0 step (and rewrites the zero border) itself.
    @pl.when(r == 0)
    def _():
        x2d = x_ref[0].reshape(H * W, Cin)
        y1 = jnp.dot(x2d, w1_ref[...], preferred_element_type=jnp.float32)
        y1 = jnp.maximum(y1 + bias_ref[0:1, :P], 0.0).astype(jnp.bfloat16)
        y1 = y1.reshape(H, W, P)
        # Register-side W-pad: store full, sublane-aligned rows into the scratch.
        zcol = jnp.zeros((H, 1, P), jnp.bfloat16)
        y1_pad = jnp.concatenate([zcol, y1, zcol], axis=1)        # (H, W+2, P)
        zrow = jnp.zeros((1, W + 2, P), jnp.bfloat16)
        mid_ref[0:1, :, :] = zrow
        mid_ref[H + 1:H + 2, :, :] = zrow
        mid_ref[1:H + 1, :, :] = y1_pad

    row0 = pl.multiple_of(r * Th, Th)

    # ---- conv2: 3x3, stride 1, pad 1 -> 9 accumulated shifted matmuls (bf16 in, f32 acc)
    acc = jnp.zeros((Th * W, P), jnp.float32)
    for ky in range(3):
        for kx in range(3):
            win = mid_ref[pl.ds(row0 + ky, Th), kx:kx + W, :].reshape(Th * W, P)
            acc = acc + jnp.dot(win, w2_ref[ky * 3 + kx],
                                preferred_element_type=jnp.float32)
    y2 = jnp.maximum(acc + bias_ref[1:2, :P], 0.0).astype(jnp.bfloat16)

    # ---- conv3: 1x1 expansion (P -> 4P) + bias + identity residual + ReLU ----
    y3 = jnp.dot(y2, w3_ref[...], preferred_element_type=jnp.float32)
    x_res = x_ref[0, pl.ds(row0, Th), :, :].reshape(Th * W, Cin).astype(jnp.float32)
    out = jnp.maximum(y3 + bias_ref[2:3, :] + x_res, 0.0)
    o_ref[0] = out.reshape(Th, W, Cout).astype(o_ref.dtype)


def bottleneck(x_nhwc, w1, w2, w3, bias, *, row_block=4):
    """x_nhwc: (N,H,W,Cin) bf16; w1:(Cin,P), w2:(9,P,P), w3:(P,4P) bf16 with BN
       scales folded in; bias: (3, 4P) f32 packed folded BN biases."""
    N, H, W, Cin = x_nhwc.shape
    P = w1.shape[1]
    Cout = w3.shape[1]
    assert Cin == Cout, "identity residual (downsample=None) needs in_channels == 4*planes"
    assert H % row_block == 0
    nrb = H // row_block

    return pl.pallas_call(
        bottleneck_kernel,
        out_shape=jax.ShapeDtypeStruct((N, H, W, Cout), jnp.bfloat16),
        grid_spec=pltpu.PrefetchScalarGridSpec(
            num_scalar_prefetch=0,
            grid=(N, nrb),                                     # batch x row-blocks
            in_specs=[
                pl.BlockSpec((1, H, W, Cin), lambda b, r: (b, 0, 0, 0)),   # resident across r
                pl.BlockSpec((Cin, P),       lambda b, r: (0, 0)),
                pl.BlockSpec((9, P, P),      lambda b, r: (0, 0, 0)),
                pl.BlockSpec((P, Cout),      lambda b, r: (0, 0)),
                pl.BlockSpec((3, Cout),      lambda b, r: (0, 0)),
            ],
            out_specs=pl.BlockSpec((1, row_block, W, Cout), lambda b, r: (b, r, 0, 0)),
            scratch_shapes=[pltpu.VMEM((H + 2, W + 2, P), jnp.bfloat16)],
        ),
        compiler_params=pltpu.CompilerParams(
            dimension_semantics=("parallel", "arbitrary"),
            vmem_limit_bytes=32 * 1024 * 1024),
    )(x_nhwc, w1, w2, w3, bias)


def reference(x_nchw, w1_oihw, w2_oihw, w3_oihw, bn1, bn2, bn3, eps):
    """Pure-JAX reference matching PyTorch BottleNeck (eval-mode BN), NCHW."""
    def conv(x, w):
        return lax.conv_general_dilated(
            x, w, window_strides=(1, 1), padding="SAME",
            dimension_numbers=("NCHW", "OIHW", "NCHW"))

    def bn(x, p):
        g, b, m, v = (t[None, :, None, None] for t in p)
        return (x - m) / jnp.sqrt(v + eps) * g + b

    out = jnp.maximum(bn(conv(x_nchw, w1_oihw), bn1), 0.0)
    out = jnp.maximum(bn(conv(out, w2_oihw), bn2), 0.0)
    out = bn(conv(out, w3_oihw), bn3)
    return jnp.maximum(out + x_nchw, 0.0)


if __name__ == "__main__":
    # BottleNeck with planes=32, expansion 4 => in_channels = out_channels = 128
    # (identity residual), batch=2, 16x16 spatial, kernel_size=3.
    N, H, W = 2, 16, 16
    planes = 32
    Cin = 4 * planes
    Cout = 4 * planes
    K = 3
    eps = 1e-5

    keys = jax.random.split(jax.random.PRNGKey(0), 16)
    x_nchw = jax.random.normal(keys[0], (N, Cin, H, W), jnp.float32)
    w1_oihw = jax.random.normal(keys[1], (planes, Cin, 1, 1), jnp.float32) / jnp.sqrt(Cin * 1.0)
    w2_oihw = jax.random.normal(keys[2], (planes, planes, K, K), jnp.float32) / jnp.sqrt(planes * K * K * 1.0)
    w3_oihw = jax.random.normal(keys[3], (Cout, planes, 1, 1), jnp.float32) / jnp.sqrt(planes * 1.0)

    def make_bn(i, C):
        g = 1.0 + 0.1 * jax.random.normal(keys[4 + 4 * i], (C,), jnp.float32)
        be = 0.1 * jax.random.normal(keys[5 + 4 * i], (C,), jnp.float32)
        m = 0.1 * jax.random.normal(keys[6 + 4 * i], (C,), jnp.float32)
        v = jax.random.uniform(keys[7 + 4 * i], (C,), jnp.float32, 0.5, 1.5)
        return (g, be, m, v)

    bn1 = make_bn(0, planes)
    bn2 = make_bn(1, planes)
    bn3 = make_bn(2, Cout)

    def fold(p):
        g, be, m, v = p
        s = g / jnp.sqrt(v + eps)
        return s.astype(jnp.float32), (be - m * s).astype(jnp.float32)

    s1, b1 = fold(bn1)
    s2, b2 = fold(bn2)
    s3, b3 = fold(bn3)

    # Layout conversion for the kernel: NCHW -> NHWC (bf16); weights -> matmul
    # form with BN scales folded in (f32 fold, then bf16 cast).
    x_nhwc = jnp.transpose(x_nchw, (0, 2, 3, 1)).astype(jnp.bfloat16)
    w1_k = (w1_oihw[:, :, 0, 0].T * s1[None, :]).astype(jnp.bfloat16)          # (Cin, P)
    w2_k = (jnp.transpose(w2_oihw, (2, 3, 1, 0)) * s2[None, None, None, :]
            ).reshape(K * K, planes, planes).astype(jnp.bfloat16)              # (9, P, P)
    w3_k = (w3_oihw[:, :, 0, 0].T * s3[None, :]).astype(jnp.bfloat16)          # (P, Cout)

    bias = jnp.zeros((3, Cout), jnp.float32)
    bias = bias.at[0, :planes].set(b1)
    bias = bias.at[1, :planes].set(b2)
    bias = bias.at[2, :].set(b3)

    out_nhwc = jax.block_until_ready(
        bottleneck(x_nhwc, w1_k, w2_k, w3_k, bias, row_block=4))
    out_nchw = jnp.transpose(out_nhwc.astype(jnp.float32), (0, 3, 1, 2))

    ref = reference(x_nchw, w1_oihw, w2_oihw, w3_oihw, bn1, bn2, bn3, eps)
    assert out_nchw.shape == ref.shape
    max_err = jnp.max(jnp.abs(out_nchw - ref))
    # matmul operands, scratch and output are bf16 (f32 accumulation), so
    # tolerances are bf16-level.
    assert jnp.allclose(out_nchw, ref, atol=5e-2, rtol=5e-2), f"max abs err {max_err}"
    print("KERNEL_OK")
</pallas_src>

<mosaic_0001>
module attributes {stable_mosaic.version = 11 : i64} {
  func.func @bottleneck_kernel(%arg0: i32, %arg1: i32, %arg2: memref<1x16x16x128xbf16, #tpu.memory_space<vmem>>, %arg3: memref<128x32xbf16, #tpu.memory_space<vmem>>, %arg4: memref<9x32x32xbf16, #tpu.memory_space<vmem>>, %arg5: memref<32x128xbf16, #tpu.memory_space<vmem>>, %arg6: memref<3x128xf32, #tpu.memory_space<vmem>>, %arg7: memref<1x4x16x128xbf16, #tpu.memory_space<vmem>>, %arg8: memref<18x18x32xbf16, #tpu.memory_space<vmem>>) attributes {dimension_semantics = [#tpu.dimension_semantics<parallel>, #tpu.dimension_semantics<arbitrary>], iteration_bounds = array<i64: 2, 4>, scalar_prefetch = 0 : i64, scratch_operands = 1 : i64, tpu.core_type = #tpu.core_type<tc>, window_params = [{transform_indices = @transform_0, window_bounds = array<i64: 1, 16, 16, 128>}, {pipeline_mode = #tpu.pipeline_mode<synchronous>, transform_indices = @transform_1, window_bounds = array<i64: 128, 32>}, {pipeline_mode = #tpu.pipeline_mode<synchronous>, transform_indices = @transform_2, window_bounds = array<i64: 9, 32, 32>}, {pipeline_mode = #tpu.pipeline_mode<synchronous>, transform_indices = @transform_3, window_bounds = array<i64: 32, 128>}, {pipeline_mode = #tpu.pipeline_mode<synchronous>, transform_indices = @transform_4, window_bounds = array<i64: 3, 128>}, {transform_indices = @transform_5, window_bounds = array<i64: 1, 4, 16, 128>}]} {
    %c0_i32 = arith.constant 0 : i32
    %0 = arith.cmpi eq, %arg1, %c0_i32 : i32
    %1 = arith.extui %0 : i1 to i32
    %c0_i32_0 = arith.constant 0 : i32
    %2 = arith.cmpi ne, %1, %c0_i32_0 : i32
    scf.if %2 {
      %c0_69 = arith.constant 0 : index
      %c0_70 = arith.constant 0 : index
      %c0_71 = arith.constant 0 : index
      %c0_72 = arith.constant 0 : index
      %102 = vector.load %arg2[%c0_69, %c0_70, %c0_71, %c0_72] : memref<1x16x16x128xbf16, #tpu.memory_space<vmem>>, vector<1x16x16x128xbf16>
      %103 = vector.shape_cast %102 : vector<1x16x16x128xbf16> to vector<16x16x128xbf16>
      %104 = vector.shape_cast %103 : vector<16x16x128xbf16> to vector<256x128xbf16>
      %c0_73 = arith.constant 0 : index
      %c0_74 = arith.constant 0 : index
      %105 = vector.load %arg3[%c0_73, %c0_74] : memref<128x32xbf16, #tpu.memory_space<vmem>>, vector<128x32xbf16>
      %cst_75 = arith.constant dense<0.000000e+00> : vector<256x32xf32>
      %106 = tpu.matmul %104, %105, %cst_75 {dimension_numbers = #tpu.dot_dimension_numbers<[1], [0], [0], [1], [0, 0, 1, 1], [], []>} : vector<256x128xbf16>, vector<128x32xbf16>, vector<256x32xf32> -> vector<256x32xf32>
      %c0_76 = arith.constant 0 : index
      %c0_77 = arith.constant 0 : index
      %107 = vector.load %arg6[%c0_76, %c0_77] : memref<3x128xf32, #tpu.memory_space<vmem>>, vector<1x32xf32>
      %108 = vector.broadcast %107 : vector<1x32xf32> to vector<256x32xf32>
      %109 = arith.addf %106, %108 : vector<256x32xf32>
      %cst_78 = arith.constant 0.000000e+00 : f32
      %110 = vector.broadcast %cst_78 : f32 to vector<256x32xf32>
      %111 = arith.maximumf %109, %110 : vector<256x32xf32>
      %112 = arith.truncf %111 : vector<256x32xf32> to vector<256x32xbf16>
      %113 = vector.shape_cast %112 : vector<256x32xbf16> to vector<16x16x32xbf16>
      %cst_79 = arith.constant 0.000000e+00 : bf16
      %114 = vector.broadcast %cst_79 : bf16 to vector<16x1x32xbf16>
      %115 = tpu.concatenate %114, %113, %114 in 1 : vector<16x1x32xbf16>, vector<16x16x32xbf16>, vector<16x1x32xbf16> -> vector<16x18x32xbf16>
      %cst_80 = arith.constant 0.000000e+00 : bf16
      %116 = vector.broadcast %cst_80 : bf16 to vector<1x18x32xbf16>
      %c0_81 = arith.constant 0 : index
      %c0_82 = arith.constant 0 : index
      %c0_83 = arith.constant 0 : index
      %117 = vector.load %arg8[%c0_81, %c0_82, %c0_83] : memref<18x18x32xbf16, #tpu.memory_space<vmem>>, vector<1x18x32xbf16>
      tpu.vector_store %arg8[%c0_81, %c0_82, %c0_83], %116 {strides = array<i32>} : memref<18x18x32xbf16, #tpu.memory_space<vmem>>, vector<1x18x32xbf16>,
      %c17 = arith.constant 17 : index
      %c0_84 = arith.constant 0 : index
      %c0_85 = arith.constant 0 : index
      %118 = vector.load %arg8[%c17, %c0_84, %c0_85] : memref<18x18x32xbf16, #tpu.memory_space<vmem>>, vector<1x18x32xbf16>
      tpu.vector_store %arg8[%c17, %c0_84, %c0_85], %116 {strides = array<i32>} : memref<18x18x32xbf16, #tpu.memory_space<vmem>>, vector<1x18x32xbf16>,
      %c1_86 = arith.constant 1 : index
      %c0_87 = arith.constant 0 : index
      %c0_88 = arith.constant 0 : index
      %119 = vector.load %arg8[%c1_86, %c0_87, %c0_88] : memref<18x18x32xbf16, #tpu.memory_space<vmem>>, vector<16x18x32xbf16>
      tpu.vector_store %arg8[%c1_86, %c0_87, %c0_88], %115 {strides = array<i32>} : memref<18x18x32xbf16, #tpu.memory_space<vmem>>, vector<16x18x32xbf16>,
    } else {
    }
    %c4_i32 = arith.constant 4 : i32
    %3 = arith.muli %arg1, %c4_i32 : i32
    %4 = tpu.assume_multiple %3, 4 : i32
    %cst = arith.constant 0.000000e+00 : f32
    %5 = vector.broadcast %cst : f32 to vector<64x32xf32>
    %c0_i32_1 = arith.constant 0 : i32
    %6 = arith.addi %4, %c0_i32_1 : i32
    %7 = arith.index_cast %6 : i32 to index
    %c0 = arith.constant 0 : index
    %c0_2 = arith.constant 0 : index
    %8 = vector.load %arg8[%7, %c0, %c0_2] : memref<18x18x32xbf16, #tpu.memory_space<vmem>>, vector<4x16x32xbf16>
    %9 = vector.shape_cast %8 : vector<4x16x32xbf16> to vector<64x32xbf16>
    %c0_3 = arith.constant 0 : index
    %c0_4 = arith.constant 0 : index
    %c0_5 = arith.constant 0 : index
    %10 = vector.load %arg4[%c0_3, %c0_4, %c0_5] : memref<9x32x32xbf16, #tpu.memory_space<vmem>>, vector<1x32x32xbf16>
    %11 = vector.shape_cast %10 : vector<1x32x32xbf16> to vector<32x32xbf16>
    %cst_6 = arith.constant dense<0.000000e+00> : vector<64x32xf32>
    %12 = tpu.matmul %9, %11, %cst_6 {dimension_numbers = #tpu.dot_dimension_numbers<[1], [0], [0], [1], [0, 0, 1, 1], [], []>} : vector<64x32xbf16>, vector<32x32xbf16>, vector<64x32xf32> -> vector<64x32xf32>
    %13 = arith.addf %5, %12 : vector<64x32xf32>
    %c0_i32_7 = arith.constant 0 : i32
    %14 = arith.addi %4, %c0_i32_7 : i32
    %15 = arith.index_cast %14 : i32 to index
    %c1 = arith.constant 1 : index
    %c0_8 = arith.constant 0 : index
    %16 = vector.load %arg8[%15, %c1, %c0_8] : memref<18x18x32xbf16, #tpu.memory_space<vmem>>, vector<4x16x32xbf16>
    %17 = vector.shape_cast %16 : vector<4x16x32xbf16> to vector<64x32xbf16>
    %c1_9 = arith.constant 1 : index
    %c0_10 = arith.constant 0 : index
    %c0_11 = arith.constant 0 : index
    %18 = vector.load %arg4[%c1_9, %c0_10, %c0_11] : memref<9x32x32xbf16, #tpu.memory_space<vmem>>, vector<1x32x32xbf16>
    %19 = vector.shape_cast %18 : vector<1x32x32xbf16> to vector<32x32xbf16>
    %cst_12 = arith.constant dense<0.000000e+00> : vector<64x32xf32>
    %20 = tpu.matmul %17, %19, %cst_12 {dimension_numbers = #tpu.dot_dimension_numbers<[1], [0], [0], [1], [0, 0, 1, 1], [], []>} : vector<64x32xbf16>, vector<32x32xbf16>, vector<64x32xf32> -> vector<64x32xf32>
    %21 = arith.addf %13, %20 : vector<64x32xf32>
    %c0_i32_13 = arith.constant 0 : i32
    %22 = arith.addi %4, %c0_i32_13 : i32
    %23 = arith.index_cast %22 : i32 to index
    %c2 = arith.constant 2 : index
    %c0_14 = arith.constant 0 : index
    %24 = vector.load %arg8[%23, %c2, %c0_14] : memref<18x18x32xbf16, #tpu.memory_space<vmem>>, vector<4x16x32xbf16>
    %25 = vector.shape_cast %24 : vector<4x16x32xbf16> to vector<64x32xbf16>
    %c2_15 = arith.constant 2 : index
    %c0_16 = arith.constant 0 : index
    %c0_17 = arith.constant 0 : index
    %26 = vector.load %arg4[%c2_15, %c0_16, %c0_17] : memref<9x32x32xbf16, #tpu.memory_space<vmem>>, vector<1x32x32xbf16>
    %27 = vector.shape_cast %26 : vector<1x32x32xbf16> to vector<32x32xbf16>
    %cst_18 = arith.constant dense<0.000000e+00> : vector<64x32xf32>
    %28 = tpu.matmul %25, %27, %cst_18 {dimension_numbers = #tpu.dot_dimension_numbers<[1], [0], [0], [1], [0, 0, 1, 1], [], []>} : vector<64x32xbf16>, vector<32x32xbf16>, vector<64x32xf32> -> vector<64x32xf32>
    %29 = arith.addf %21, %28 : vector<64x32xf32>
    %c1_i32 = arith.constant 1 : i32
    %30 = arith.addi %4, %c1_i32 : i32
    %31 = arith.index_cast %30 : i32 to index
    %c0_19 = arith.constant 0 : index
    %c0_20 = arith.constant 0 : index
    %32 = vector.load %arg8[%31, %c0_19, %c0_20] : memref<18x18x32xbf16, #tpu.memory_space<vmem>>, vector<4x16x32xbf16>
    %33 = vector.shape_cast %32 : vector<4x16x32xbf16> to vector<64x32xbf16>
    %c3 = arith.constant 3 : index
    %c0_21 = arith.constant 0 : index
    %c0_22 = arith.constant 0 : index
    %34 = vector.load %arg4[%c3, %c0_21, %c0_22] : memref<9x32x32xbf16, #tpu.memory_space<vmem>>, vector<1x32x32xbf16>
    %35 = vector.shape_cast %34 : vector<1x32x32xbf16> to vector<32x32xbf16>
    %cst_23 = arith.constant dense<0.000000e+00> : vector<64x32xf32>
    %36 = tpu.matmul %33, %35, %cst_23 {dimension_numbers = #tpu.dot_dimension_numbers<[1], [0], [0], [1], [0, 0, 1, 1], [], []>} : vector<64x32xbf16>, vector<32x32xbf16>, vector<64x32xf32> -> vector<64x32xf32>
    %37 = arith.addf %29, %36 : vector<64x32xf32>
    %c1_i32_24 = arith.constant 1 : i32
    %38 = arith.addi %4, %c1_i32_24 : i32
    %39 = arith.index_cast %38 : i32 to index
    %c1_25 = arith.constant 1 : index
    %c0_26 = arith.constant 0 : index
    %40 = vector.load %arg8[%39, %c1_25, %c0_26] : memref<18x18x32xbf16, #tpu.memory_space<vmem>>, vector<4x16x32xbf16>
    %41 = vector.shape_cast %40 : vector<4x16x32xbf16> to vector<64x32xbf16>
    %c4 = arith.constant 4 : index
    %c0_27 = arith.constant 0 : index
    %c0_28 = arith.constant 0 : index
    %42 = vector.load %arg4[%c4, %c0_27, %c0_28] : memref<9x32x32xbf16, #tpu.memory_space<vmem>>, vector<1x32x32xbf16>
    %43 = vector.shape_cast %42 : vector<1x32x32xbf16> to vector<32x32xbf16>
    %cst_29 = arith.constant dense<0.000000e+00> : vector<64x32xf32>
    %44 = tpu.matmul %41, %43, %cst_29 {dimension_numbers = #tpu.dot_dimension_numbers<[1], [0], [0], [1], [0, 0, 1, 1], [], []>} : vector<64x32xbf16>, vector<32x32xbf16>, vector<64x32xf32> -> vector<64x32xf32>
    %45 = arith.addf %37, %44 : vector<64x32xf32>
    %c1_i32_30 = arith.constant 1 : i32
    %46 = arith.addi %4, %c1_i32_30 : i32
    %47 = arith.index_cast %46 : i32 to index
    %c2_31 = arith.constant 2 : index
    %c0_32 = arith.constant 0 : index
    %48 = vector.load %arg8[%47, %c2_31, %c0_32] : memref<18x18x32xbf16, #tpu.memory_space<vmem>>, vector<4x16x32xbf16>
    %49 = vector.shape_cast %48 : vector<4x16x32xbf16> to vector<64x32xbf16>
    %c5 = arith.constant 5 : index
    %c0_33 = arith.constant 0 : index
    %c0_34 = arith.constant 0 : index
    %50 = vector.load %arg4[%c5, %c0_33, %c0_34] : memref<9x32x32xbf16, #tpu.memory_space<vmem>>, vector<1x32x32xbf16>
    %51 = vector.shape_cast %50 : vector<1x32x32xbf16> to vector<32x32xbf16>
    %cst_35 = arith.constant dense<0.000000e+00> : vector<64x32xf32>
    %52 = tpu.matmul %49, %51, %cst_35 {dimension_numbers = #tpu.dot_dimension_numbers<[1], [0], [0], [1], [0, 0, 1, 1], [], []>} : vector<64x32xbf16>, vector<32x32xbf16>, vector<64x32xf32> -> vector<64x32xf32>
    %53 = arith.addf %45, %52 : vector<64x32xf32>
    %c2_i32 = arith.constant 2 : i32
    %54 = arith.addi %4, %c2_i32 : i32
    %55 = arith.index_cast %54 : i32 to index
    %c0_36 = arith.constant 0 : index
    %c0_37 = arith.constant 0 : index
    %56 = vector.load %arg8[%55, %c0_36, %c0_37] : memref<18x18x32xbf16, #tpu.memory_space<vmem>>, vector<4x16x32xbf16>
    %57 = vector.shape_cast %56 : vector<4x16x32xbf16> to vector<64x32xbf16>
    %c6 = arith.constant 6 : index
    %c0_38 = arith.constant 0 : index
    %c0_39 = arith.constant 0 : index
    %58 = vector.load %arg4[%c6, %c0_38, %c0_39] : memref<9x32x32xbf16, #tpu.memory_space<vmem>>, vector<1x32x32xbf16>
    %59 = vector.shape_cast %58 : vector<1x32x32xbf16> to vector<32x32xbf16>
    %cst_40 = arith.constant dense<0.000000e+00> : vector<64x32xf32>
    %60 = tpu.matmul %57, %59, %cst_40 {dimension_numbers = #tpu.dot_dimension_numbers<[1], [0], [0], [1], [0, 0, 1, 1], [], []>} : vector<64x32xbf16>, vector<32x32xbf16>, vector<64x32xf32> -> vector<64x32xf32>
    %61 = arith.addf %53, %60 : vector<64x32xf32>
    %c2_i32_41 = arith.constant 2 : i32
    %62 = arith.addi %4, %c2_i32_41 : i32
    %63 = arith.index_cast %62 : i32 to index
    %c1_42 = arith.constant 1 : index
    %c0_43 = arith.constant 0 : index
    %64 = vector.load %arg8[%63, %c1_42, %c0_43] : memref<18x18x32xbf16, #tpu.memory_space<vmem>>, vector<4x16x32xbf16>
    %65 = vector.shape_cast %64 : vector<4x16x32xbf16> to vector<64x32xbf16>
    %c7 = arith.constant 7 : index
    %c0_44 = arith.constant 0 : index
    %c0_45 = arith.constant 0 : index
    %66 = vector.load %arg4[%c7, %c0_44, %c0_45] : memref<9x32x32xbf16, #tpu.memory_space<vmem>>, vector<1x32x32xbf16>
    %67 = vector.shape_cast %66 : vector<1x32x32xbf16> to vector<32x32xbf16>
    %cst_46 = arith.constant dense<0.000000e+00> : vector<64x32xf32>
    %68 = tpu.matmul %65, %67, %cst_46 {dimension_numbers = #tpu.dot_dimension_numbers<[1], [0], [0], [1], [0, 0, 1, 1], [], []>} : vector<64x32xbf16>, vector<32x32xbf16>, vector<64x32xf32> -> vector<64x32xf32>
    %69 = arith.addf %61, %68 : vector<64x32xf32>
    %c2_i32_47 = arith.constant 2 : i32
    %70 = arith.addi %4, %c2_i32_47 : i32
    %71 = arith.index_cast %70 : i32 to index
    %c2_48 = arith.constant 2 : index
    %c0_49 = arith.constant 0 : index
    %72 = vector.load %arg8[%71, %c2_48, %c0_49] : memref<18x18x32xbf16, #tpu.memory_space<vmem>>, vector<4x16x32xbf16>
    %73 = vector.shape_cast %72 : vector<4x16x32xbf16> to vector<64x32xbf16>
    %c8 = arith.constant 8 : index
    %c0_50 = arith.constant 0 : index
    %c0_51 = arith.constant 0 : index
    %74 = vector.load %arg4[%c8, %c0_50, %c0_51] : memref<9x32x32xbf16, #tpu.memory_space<vmem>>, vector<1x32x32xbf16>
    %75 = vector.shape_cast %74 : vector<1x32x32xbf16> to vector<32x32xbf16>
    %cst_52 = arith.constant dense<0.000000e+00> : vector<64x32xf32>
    %76 = tpu.matmul %73, %75, %cst_52 {dimension_numbers = #tpu.dot_dimension_numbers<[1], [0], [0], [1], [0, 0, 1, 1], [], []>} : vector<64x32xbf16>, vector<32x32xbf16>, vector<64x32xf32> -> vector<64x32xf32>
    %77 = arith.addf %69, %76 : vector<64x32xf32>
    %c1_53 = arith.constant 1 : index
    %c0_54 = arith.constant 0 : index
    %78 = vector.load %arg6[%c1_53, %c0_54] : memref<3x128xf32, #tpu.memory_space<vmem>>, vector<1x32xf32>
    %79 = vector.broadcast %78 : vector<1x32xf32> to vector<64x32xf32>
    %80 = arith.addf %77, %79 : vector<64x32xf32>
    %cst_55 = arith.constant 0.000000e+00 : f32
    %81 = vector.broadcast %cst_55 : f32 to vector<64x32xf32>
    %82 = arith.maximumf %80, %81 : vector<64x32xf32>
    %83 = arith.truncf %82 : vector<64x32xf32> to vector<64x32xbf16>
    %c0_56 = arith.constant 0 : index
    %c0_57 = arith.constant 0 : index
    %84 = vector.load %arg5[%c0_56, %c0_57] : memref<32x128xbf16, #tpu.memory_space<vmem>>, vector<32x128xbf16>
    %cst_58 = arith.constant dense<0.000000e+00> : vector<64x128xf32>
    %85 = tpu.matmul %83, %84, %cst_58 {dimension_numbers = #tpu.dot_dimension_numbers<[1], [0], [0], [1], [0, 0, 1, 1], [], []>} : vector<64x32xbf16>, vector<32x128xbf16>, vector<64x128xf32> -> vector<64x128xf32>
    %c0_59 = arith.constant 0 : index
    %86 = arith.index_cast %4 : i32 to index
    %c0_60 = arith.constant 0 : index
    %c0_61 = arith.constant 0 : index
    %87 = vector.load %arg2[%c0_59, %86, %c0_60, %c0_61] : memref<1x16x16x128xbf16, #tpu.memory_space<vmem>>, vector<1x4x16x128xbf16>
    %88 = vector.shape_cast %87 : vector<1x4x16x128xbf16> to vector<4x16x128xbf16>
    %89 = vector.shape_cast %88 : vector<4x16x128xbf16> to vector<64x128xbf16>
    %90 = arith.extf %89 : vector<64x128xbf16> to vector<64x128xf32>
    %c2_62 = arith.constant 2 : index
    %c0_63 = arith.constant 0 : index
    %91 = vector.load %arg6[%c2_62, %c0_63] : memref<3x128xf32, #tpu.memory_space<vmem>>, vector<1x128xf32>
    %92 = vector.broadcast %91 : vector<1x128xf32> to vector<64x128xf32>
    %93 = arith.addf %85, %92 : vector<64x128xf32>
    %94 = arith.addf %93, %90 : vector<64x128xf32>
    %cst_64 = arith.constant 0.000000e+00 : f32
    %95 = vector.broadcast %cst_64 : f32 to vector<64x128xf32>
    %96 = arith.maximumf %94, %95 : vector<64x128xf32>
    %97 = vector.shape_cast %96 : vector<64x128xf32> to vector<4x16x128xf32>
    %98 = arith.truncf %97 : vector<4x16x128xf32> to vector<4x16x128xbf16>
    %c0_65 = arith.constant 0 : index
    %c0_66 = arith.constant 0 : index
    %c0_67 = arith.constant 0 : index
    %c0_68 = arith.constant 0 : index
    %99 = vector.load %arg7[%c0_65, %c0_66, %c0_67, %c0_68] : memref<1x4x16x128xbf16, #tpu.memory_space<vmem>>, vector<1x4x16x128xbf16>
    %100 = vector.shape_cast %99 : vector<1x4x16x128xbf16> to vector<4x16x128xbf16>
    %101 = vector.shape_cast %98 : vector<4x16x128xbf16> to vector<1x4x16x128xbf16>
    tpu.vector_store %arg7[%c0_65, %c0_66, %c0_67, %c0_68], %101 {strides = array<i32>} : memref<1x4x16x128xbf16, #tpu.memory_space<vmem>>, vector<1x4x16x128xbf16>,
    return
  }
  func.func @transform_0(%arg0: i32, %arg1: i32) -> (i32, i32, i32, i32) {
    %c0_i32 = arith.constant 0 : i32
    %c0_i32_0 = arith.constant 0 : i32
    %c0_i32_1 = arith.constant 0 : i32
    %c0_i32_2 = arith.constant 0 : i32
    return %arg0, %c0_i32, %c0_i32_0, %c0_i32_1 : i32, i32, i32, i32
  }
  func.func @transform_1(%arg0: i32, %arg1: i32) -> (i32, i32) {
    %c0_i32 = arith.constant 0 : i32
    %c0_i32_0 = arith.constant 0 : i32
    %c0_i32_1 = arith.constant 0 : i32
    return %c0_i32, %c0_i32_0 : i32, i32
  }
  func.func @transform_2(%arg0: i32, %arg1: i32) -> (i32, i32, i32) {
    %c0_i32 = arith.constant 0 : i32
    %c0_i32_0 = arith.constant 0 : i32
    %c0_i32_1 = arith.constant 0 : i32
    %c0_i32_2 = arith.constant 0 : i32
    return %c0_i32, %c0_i32_0, %c0_i32_1 : i32, i32, i32
  }
  func.func @transform_3(%arg0: i32, %arg1: i32) -> (i32, i32) {
    %c0_i32 = arith.constant 0 : i32
    %c0_i32_0 = arith.constant 0 : i32
    %c0_i32_1 = arith.constant 0 : i32
    return %c0_i32, %c0_i32_0 : i32, i32
  }
  func.func @transform_4(%arg0: i32, %arg1: i32) -> (i32, i32) {
    %c0_i32 = arith.constant 0 : i32
    %c0_i32_0 = arith.constant 0 : i32
    %c0_i32_1 = arith.constant 0 : i32
    return %c0_i32, %c0_i32_0 : i32, i32
  }
  func.func @transform_5(%arg0: i32, %arg1: i32) -> (i32, i32, i32, i32) {
    %c0_i32 = arith.constant 0 : i32
    %c0_i32_0 = arith.constant 0 : i32
    %c0_i32_1 = arith.constant 0 : i32
    return %arg0, %arg1, %c0_i32, %c0_i32_0 : i32, i32, i32, i32
  }
}

</mosaic_0001>

<bundles_post_ra>
// kernel: tpu_custom_call.1
= control target key start
LH: loop header
LB: loop body
LE: loop exit
PB: predicated region body
PF: predicated region fallthrough
CT: control target
= control target key end

     0   :  { %s4779_s0 = inlined_call_operand.hbm [shape: bf16[2,16,16,128], index: 0, kind: input, shape index: {}]   ;;  %s4780_s1 = inlined_call_operand.vmem [shape: bf16[128,32], index: 1, kind: input, shape index: {}]   ;;  %s4781_s2 = inlined_call_operand.hbm [shape: bf16[9,32,32], index: 2, kind: input, shape index: {}]   ;;  %s4782_s3 = inlined_call_operand.vmem [shape: bf16[32,128], index: 3, kind: input, shape index: {}]   ;;  %s4783_s4 = inlined_call_operand.vmem [shape: f32[3,128], index: 4, kind: input, shape index: {}]   ;;  %s4784_s5 = inlined_call_operand.hbm [shape: bf16[2,16,16,128], index: 5, kind: output, shape index: {}]  }
   0x1   :  { %4796 = sst [smem:[#allocation23_spill]] %s4781_s2 }
   0x2   :  { %4797 = sst [smem:[#allocation24_spill]] %s4784_s5 }
   0x3   :  { %10 = vsyncpa [#allocation4], 0 }
   0x4   :  { %12 = vsyncpa [#allocation4 + $0x1], 0 }
   0x5   :  { %13 = vsyncpa [#allocation7], 0 }
   0x6   :  { %14 = vsyncpa [#allocation5], 0 }
   0x7   :  { %16 = vsyncpa [#allocation5 + $0x1], 0  ;;  %s3924_s18 = smov 0   ;;  %s3926_s19 = smov 0  }
   0x8   :  { %s3928_s20 = smov 0   ;;  %s3930_s21 = smov 0  }
   0x9   :  { %s3932_s22 = smov 0   ;;  %s3934_s23 = smov 0  }
   0xa   :  { %s3936_s24 = smov 0   ;;  %s3938_s25 = smov 0  }
   0xb   :  { %s3940_s26 = smov 0   ;;  %s3942_s27 = smov 0  }
   0xc   :  { %s3944_s28 = smov 0  }
   0xd LB: > { %4798 = sst [smem:[#allocation12_spill]] %s3844_s18  ;;  %s2941_s29 = sadd.s32 4294967295, %s3884_s28   ;;  %s3884_s28 = sphi %s3944_s28, %s22_s28   ;;  %s3880_s27 = sphi %s3942_s27, %s4849_s27   ;;  %s3876_s26 = sphi %s3940_s26, %s4848_s26   ;;  %s3872_s25 = sphi %s3938_s25, %s4847_s25   ;;  %s3868_s24 = sphi %s3936_s24, %s4838_s24   ;;  %s3864_s23 = sphi %s3934_s23, %s4846_s23   ;;  %s3860_s22 = sphi %s3932_s22, %s4845_s22   ;;  %s3856_s21 = sphi %s3930_s21, %s4844_s21   ;;  %s3852_s20 = sphi %s3928_s20, %s4843_s20   ;;  %s3848_s19 = sphi %s3926_s19, %s4842_s19   ;;  %s3844_s18 = sphi %s3924_s18, %s4841_s18  }
   0xe   : > { %4799 = sst [smem:[#allocation13_spill]] %s3872_s25  ;;  %s2942_s30 = sadd.s32 4294967294, %s3884_s28  }
   0xf   : > { %4800 = sst [smem:[#allocation14_spill]] %s3876_s26  ;;  %p54_p0 = scmp.ne.s32.totalorder %s3860_s22, %s3856_s21 }
  0x10   : > { %p3980_p1 = scmp.eq.s32.totalorder %s2941_s29, 0  ;;  %p163_p2 = scmp.ne.s32.totalorder %s3852_s20, %s3848_s19 }
  0x11   : > { %p164_p4 = scmp.eq.s32.totalorder %s2941_s29, 7  ;;  %p169_p5 = scmp.ne.s32.totalorder %s3848_s19, %s3844_s18 }
  0x12   : > { %p3989_p3 = por %p3980_p1, %p54_p0  ;;  %p170_p6 = scmp.eq.s32.totalorder %s2942_s30, 7 }
  0x13   : > { %p3995_p7 = por %p164_p4, %p163_p2  ;;  %p2943_p8 = scmp.ge.s32.totalorder %s3884_s28, 1 }
  0x14   : > { %p4000_p9 = por %p170_p6, %p169_p5  ;;  %p177_p10 = scmp.lt.s32.totalorder %s3884_s28, 9 }
  0x15   : > { %s4803_s9 = scalar_select %p3995_p7, 1, 0 }
  0x16   : > { %s4805_s10 = scalar_select %p4000_p9, 1, 0 }
  0x17   : > { %4804 = sst [smem:[#allocation15_spill]] %s4803_s9  ;;  %p4005_p11 = pnand %p2943_p8, %p177_p10 }
  0x18   : > { %4806 = sst [smem:[#allocation16_spill]] %s4805_s10  ;;  %s3886_s12 = smov [#allocation6]  }
  0x19   : > { %s192_s13 = sshll.u32 %s3886_s12, 4  ;;  %p3540_p12 = pneg %p4005_p11  ;;  %s193_s13 = int_to_ptr.vmem [resolvable:$true] %s192_s13 }
  0x1a   : > { %s3717_s14 = scalar_lea.vmem %s193_s13, 2304  ;;  %p3725_p6 = scmp.lt.s32.totalorder %s193_s13, %s193_s13 }
  0x1b   : > { %p3541_p13 = pnand %p3540_p12, %p3980_p1  ;;  %p3718_p2 = scmp.ne.s32.totalorder %s193_s13, %s3717_s14 }
  0x1c   : > { %p3726_p9 = scmp.lt.s32.totalorder %s3717_s14, %s3717_s14 }
  0x1d   : > { %p3708_p0 = pneg %p3541_p13 }
  0x1e   : > { %p3727_p7 = por %p3726_p9, %p3725_p6 }
  0x1f   : > { %p3720_p4 = pnand %p3718_p2, %p3708_p0 }
  0x21   : > { %p3721_p5 = pneg %p3720_p4 }
  0x23   : > { %p3728_p8 = pnand %p3727_p7, %p3721_p5 }
  0x25   : > { %3731 = shalt.err (!%p3728_p8)
}
  0x26   : > { %s4786_s15 = smov 64   ;;  %s4787_s16 = smov 4  }
  0x27   : > { %s4808_s2 = sld [smem:[#allocation23_spill]]  ;;  %s31_s29 = sadd.s32 1, %s3876_s26 }
  0x28   : > { %p32_p7 = scmp.ge.s32.totalorder %s31_s29, 4  ;;  %s34_s30 = sadd.s32 1, %s3880_s27 }
  0x29   : > { %s41_s12 = sadd.s32 1, %s3864_s23  ;;  %p48_p9 = scmp.ne.s32.totalorder %s3864_s23, %s3860_s22 }
  0x2a   : > { %s4851_s29 = smov (%p32_p7, %s31_s29), 0  ;;  %s4853_s30 = smov (!%p32_p7, %s34_s30), %s3880_s27 }
  0x2b   : > { %4809 = sst [smem:[#allocation17_spill]] %s4851_s29  ;;  %p49_p10 = scmp.eq.s32.totalorder %s3884_s28, 0 }
  0x2c   : > { %s149_s14 = ssub.s32 %s3876_s26, %s4851_s29  ;;  %p36_p12 = scmp.ge.s32.totalorder %s4853_s30, 2 }
  0x2d   : > { %3543 = dma.hbm_to_vmem [thread:$0]  (!%p3541_p13), %s4808_s2, 2304, %s193_s13, [#allocation7], %s4786_s15, %s4786_s15, %s4787_s16  }
  0x2e   : > { %p3553_p0 = scmp.lt.s32.totalorder %s3884_s28, 8  ;;  %p4031_p13 = por %p49_p10, %p48_p9 }
  0x2f   : > { %s212_s17 = sand.u32 1, %s3864_s23   ;;  %s4855_s30 = smov (%p36_p12, %s4853_s30), 0 }
  0x30   : > { %4811 = sst [smem:[#allocation18_spill]] %s4855_s30  ;;  %s2946_s21 = sshll.u32 %s212_s17, 7 }
  0x31   : > { %s38_s15 = ssub.s32 %s3880_s27, %s4855_s30  ;;  %s3209_s7 = sshll.u32 %s3880_s27, 11 }
  0x32   : > { %p39_p2 = scmp.eq.s32.totalorder %s38_s15, 0  ;;  %s150_s16 = sor.u32 %s149_s14, %s38_s15 }
  0x33   : > { %p151_p4 = scmp.eq.s32.totalorder %s150_s16, 0  ;;  %s4812_s29 = sadd.s32 1, %s3852_s20 }
  0x34   : > { %s4042_s2 = scalar_select %p39_p2, %s3864_s23, %s41_s12  }
  0x35   : > { %s4047_s26 = scalar_select %p151_p4, %s3852_s20, %s4812_s29  }
  0x36   : > { %s222_s5 = scalar_lea.hbm %s4779_s0, %s3209_s7  ;;  %s216_s9 = scalar_lea.vmem [#allocation3], %s2946_s21 }
  0x37   : > { %s223_s25 = sshll.u32 %s216_s9, 4  ;;  %p4056_p5 = pnand %p3553_p0, %p4031_p13  ;;  %s224_s25 = int_to_ptr.vmem [resolvable:$true] %s223_s25 }
  0x38   : > { %s213_s15 = scalar_lea.sflag [#allocation4], %s212_s17  ;;  %s3745_s16 = scalar_lea.vmem %s224_s25, 2048 }
  0x39   : > { %p3734_p6 = pneg %p4056_p5  ;;  %p3746_p8 = scmp.ne.s32.totalorder %s224_s25, %s3745_s16 }
  0x3a   : > { %s3889_s29 = smov [#allocation3]  }
  0x3b   : > { %p3748_p7 = pnand %p3746_p8, %p3734_p6  ;;  %s3750_s18 = sshll.u32 %s3889_s29, 4  ;;  %s3751_s18 = int_to_ptr.vmem [resolvable:$false] %s3750_s18 }
  0x3c   : > { %s3752_s7 = scalar_lea.vmem %s3751_s18, 4096  ;;  %p3753_p10 = scmp.lt.s32.totalorder %s224_s25, %s3751_s18 }
  0x3d   : > { %p3749_p9 = pneg %p3748_p7  ;;  %p3754_p12 = scmp.lt.s32.totalorder %s3752_s7, %s3745_s16 }
  0x3f   : > { %p3755_p2 = por %p3754_p12, %p3753_p10 }
  0x41   : > { %p3756_p4 = pnand %p3755_p2, %p3749_p9 }
  0x43   : > { %3759 = shalt.err (!%p3756_p4)
}
  0x44   : > { %s4814_s9 = smov 4   ;;  %s4815_s10 = smov 64  }
  0x45   : > { %3547 = dma.hbm_to_vmem [thread:$0]  (!%p4056_p5), %s222_s5, 2048, %s224_s25, %s213_s15, %s4815_s10, %s4815_s10, %s4814_s9  }
  0x46   : > { %235 = sbr.rel (%p4005_p11) target bundleno = 906 (0x38a), region = 40 }
  0x4b   : > { %s237_s12 = sand.u32 1, %s3860_s22  }
  0x4c   : > { %s2950_s14 = sshll.u32 %s237_s12, 7  ;;  %s238_s13 = scalar_lea.sflag [#allocation4], %s237_s12 }
  0x4d   : > { %s4070_s17 = scalar_lea.vmem [#allocation3], %s2950_s14 }
  0x4e   : > { %3831 = dma.done.wait (%p3989_p3), %s238_s13, 2048  }
  0x4f   : > { %3833 = vsyncadd (%p3989_p3), %s238_s13, 4294965248 }
  0x50   : > { %3835 = dma.done.wait (%p3980_p1), [#allocation7], 2304  }
  0x51   : > { %3837 = vsyncadd (%p3980_p1), [#allocation7], 4294964992  ;;  %s269_s5 = sand.u32 1, %s3848_s19   ;;  %p2953_p11 = scmp.ne.s32.totalorder %s3868_s24, 0 }
  0x52   : > { %s2952_s25 = sshll.u32 %s269_s5, 5 }
  0x53   : > { %s4083_s11 = scalar_lea.vmem [#allocation8], %s2952_s25  ;;  %277 = sbr.rel (%p2953_p11) target bundleno = 381 (0x17d), region = 52 }
  0x58   : > { %v3650_v0 = vld [vmem:[%s4780_s1 + $0x38] sm:$0xff]   ;;  %v3651_v1 = vld [vmem:[%s4780_s1 + $0x30] sm:$0xff]   ;;  %v3652_v2 = vld [vmem:[%s4780_s1 + $0x28] sm:$0xff]   ;;  %vm863_vm0 = vcmask 257024   ;;  %vm866_vm1 = vcmask 253952   ;;  %v3890_v24 = vmov 0  }
  0x59   : > { %3348 = vmatprep.subr.bf16.mxu0 %v3650_v0  ;;  %3516 = vmatprep.subr.bf16.mxu1 %v3650_v0  ;;  %v3653_v3 = vld [vmem:[%s4780_s1 + $0x20] sm:$0xff]   ;;  %v3658_v4 = vld [vmem:[%s4070_s17] sm:$0xff]   ;;  %v3655_v7 = vld [vmem:[%s4780_s1 + $0x10] sm:$0xff]   ;;  %864 = vst.msk [vmem:[#allocation2] sm:$0xf] %vm863_vm0, %v3890_v24  ;;  %vm828_vm2 = vcmask 1040384  }
  0x5a   : > { %3349 = vmatpush3.bf16.msra.mxu0 %v3650_v0  ;;  %3524 = vmatpush3.bf16.msra.mxu1 %v3650_v0  ;;  %v3659_v5 = vld [vmem:[%s4070_s17 + $0x40] sm:$0xff]   ;;  %v3656_v8 = vld [vmem:[%s4780_s1 + $0x8] sm:$0xff]   ;;  %v3657_v9 = vld [vmem:[%s4780_s1] sm:$0xff]   ;;  %865 = vst.msk [vmem:[#allocation2 + $0x4] sm:$0xf] %vm863_vm0, %v3890_v24 }
  0x5b   : > { %3350 = vmatprep.subr.bf16.mxu0 %v3651_v1  ;;  %3517 = vmatprep.subr.bf16.mxu1 %v3651_v1  ;;  %v3654_v6 = vld [vmem:[%s4780_s1 + $0x18] sm:$0xff]   ;;  %v3660_v10 = vld [vmem:[%s4070_s17 + $0x8] sm:$0xff]   ;;  %v3662_v12 = vld [vmem:[%s4070_s17 + $0x10] sm:$0xff]   ;;  %867 = vst.msk [vmem:[#allocation2 + $0x8] sm:$0x1] %vm866_vm1, %v3890_v24 }
  0x5c   : > { %3364 = vmatprep.mubr.bf16.mxu0 %v3658_v4  ;;  %3380 = vmatprep.mubr.bf16.mxu1 %v3659_v5  ;;  %v3661_v11 = vld [vmem:[%s4070_s17 + $0x48] sm:$0xff]   ;;  %v3663_v13 = vld [vmem:[%s4070_s17 + $0x50] sm:$0xff]   ;;  %v3664_v14 = vld [vmem:[%s4070_s17 + $0x18] sm:$0xff]   ;;  %869 = vst.msk [vmem:[#allocation2 + $0xcc] sm:$0xf] %vm863_vm0, %v3890_v24 }
  0x5d   : > { %v3665_v15 = vld [vmem:[%s4070_s17 + $0x58] sm:$0xff]   ;;  %v3666_v16 = vld [vmem:[%s4070_s17 + $0x20] sm:$0xff]   ;;  %v3668_v18 = vld [vmem:[%s4070_s17 + $0x28] sm:$0xff]   ;;  %870 = vst.msk [vmem:[#allocation2 + $0xd0] sm:$0xf] %vm863_vm0, %v3890_v24 }
  0x5e   : > { %3351 = vmatpush3.bf16.msra.mxu0 %v3651_v1  ;;  %3525 = vmatpush3.bf16.msra.mxu1 %v3651_v1  ;;  %v3667_v17 = vld [vmem:[%s4070_s17 + $0x60] sm:$0xff]   ;;  %v3669_v19 = vld [vmem:[%s4070_s17 + $0x68] sm:$0xff]   ;;  %v3670_v20 = vld [vmem:[%s4070_s17 + $0x30] sm:$0xff]   ;;  %871 = vst.msk [vmem:[#allocation2 + $0xd4] sm:$0x1] %vm866_vm1, %v3890_v24 }
  0x5f   : > { %3352 = vmatprep.subr.bf16.mxu0 %v3652_v2  ;;  %3518 = vmatprep.subr.bf16.mxu1 %v3652_v2  ;;  %v3671_v21 = vld [vmem:[%s4070_s17 + $0x70] sm:$0xff]   ;;  %v3672_v22 = vld [vmem:[%s4070_s17 + $0x38] sm:$0xff]   ;;  %v4135_v25 = vld [vmem:[%s4783_s4] ss:$0 sm:$0xff]  ;;  %vm829_vm3 = vsmask.f32 256 }
  0x60   : > { %v3673_v23 = vld [vmem:[%s4070_s17 + $0x78] sm:$0xff]   ;;  %vm4153_vm4 = vmand %vm828_vm2, %vm829_vm3 }
  0x62   : > { %3353 = vmatpush3.bf16.msra.mxu0 %v3652_v2  ;;  %3526 = vmatpush3.bf16.msra.mxu1 %v3652_v2 }
  0x63   : > { %3354 = vmatprep.subr.bf16.mxu0 %v3653_v3  ;;  %3519 = vmatprep.subr.bf16.mxu1 %v3653_v3 }
  0x66   : > { %3355 = vmatpush3.bf16.msra.mxu0 %v3653_v3  ;;  %3527 = vmatpush3.bf16.msra.mxu1 %v3653_v3 }
  0x67   : > { %3356 = vmatprep.subr.bf16.mxu0 %v3654_v6  ;;  %3520 = vmatprep.subr.bf16.mxu1 %v3654_v6 }
  0x6a   : > { %3357 = vmatpush3.bf16.msra.mxu0 %v3654_v6  ;;  %3528 = vmatpush3.bf16.msra.mxu1 %v3654_v6 }
  0x6b   : > { %3358 = vmatprep.subr.bf16.mxu0 %v3655_v7  ;;  %3521 = vmatprep.subr.bf16.mxu1 %v3655_v7 }
  0x6e   : > { %3359 = vmatpush3.bf16.msra.mxu0 %v3655_v7  ;;  %3529 = vmatpush3.bf16.msra.mxu1 %v3655_v7 }
  0x6f   : > { %3360 = vmatprep.subr.bf16.mxu0 %v3656_v8  ;;  %3522 = vmatprep.subr.bf16.mxu1 %v3656_v8 }
  0x72   : > { %3361 = vmatpush3.bf16.msra.mxu0 %v3656_v8  ;;  %3530 = vmatpush3.bf16.msra.mxu1 %v3656_v8 }
  0x73   : > { %3362 = vmatprep.subr.bf16.mxu0 %v3657_v9  ;;  %3523 = vmatprep.subr.bf16.mxu1 %v3657_v9 }
  0x76   : > { %3363 = vmatpush3.bf16.msra.mxu0 %v3657_v9  ;;  %3531 = vmatpush3.bf16.msra.mxu1 %v3657_v9 }
  0x79   : > { %3365 = vmatmul.mubr.bf16.vlgmr.msra.gmra.mxu0 %v3660_v10  ;;  %3381 = vmatmul.mubr.bf16.vlgmr.msra.gmra.mxu1 %v3661_v11 }
  0x7a   : > { %3368 = vmatprep.mubr.bf16.mxu0 %v3662_v12  ;;  %3384 = vmatprep.mubr.bf16.mxu1 %v3663_v13 }
  0x81   : > { %3369 = vmatmul.mubr.bf16.gmra.mxu0 %v3664_v14  ;;  %3385 = vmatmul.mubr.bf16.gmra.mxu1 %v3665_v15 }
  0x82   : > { %3372 = vmatprep.mubr.bf16.mxu0 %v3666_v16  ;;  %3388 = vmatprep.mubr.bf16.mxu1 %v3667_v17 }
  0x89   : > { %3373 = vmatmul.mubr.bf16.gmra.mxu0 %v3668_v18  ;;  %3389 = vmatmul.mubr.bf16.gmra.mxu1 %v3669_v19 }
  0x8a   : > { %3376 = vmatprep.mubr.bf16.mxu0 %v3670_v20  ;;  %3392 = vmatprep.mubr.bf16.mxu1 %v3671_v21 }
  0x91   : > { %3377 = vmatmul.mubr.bf16.gmra.mxu0 %v3672_v22  ;;  %3393 = vmatmul.mubr.bf16.gmra.mxu1 %v3673_v23 }
 0x139   : > { %v3366_v26 = vpop.f32.mrf.mxu0  ;;  %v3382_v27 = vpop.f32.mrf.mxu1 }
 0x13a   : > { %v518_v28 = vadd.f32 %v3366_v26, %v4135_v25  ;;  %v582_v29 = vadd.f32 %v3382_v27, %v4135_v25 }
 0x13b   : > { %v509_v30 = vpop.f32.mrf.mxu0  ;;  %v573_v31 = vpop.f32.mrf.mxu1 }
 0x13c   : > { %v638_v36 = vmax.f32 %v518_v28, 0.0  ;;  %v654_v37 = vmax.f32 %v582_v29, 0.0  ;;  %v510_v38 = vadd.f32 %v4135_v25, %v509_v30  ;;  %v574_v39 = vadd.f32 %v4135_v25, %v573_v31 }
 0x13d   : > { %v3367_v32 = vpop.f32.mrf.mxu0  ;;  %v3383_v33 = vpop.f32.mrf.mxu1 }
 0x13e   : > { %v521_v34 = vadd.f32 %v3367_v32, %v4135_v25  ;;  %v585_v35 = vadd.f32 %v3383_v33, %v4135_v25  ;;  %v636_v52 = vmax.f32 %v510_v38, 0.0  ;;  %v652_v53 = vmax.f32 %v574_v39, 0.0 }
 0x13f   : > { %v512_v40 = vpop.f32.mrf.mxu0  ;;  %v576_v41 = vpop.f32.mrf.mxu1 }
 0x140   : > { %v639_v42 = vmax.f32 %v521_v34, 0.0  ;;  %v655_v43 = vmax.f32 %v585_v35, 0.0  ;;  %v513_v44 = vadd.f32 %v4135_v25, %v512_v40  ;;  %v577_v45 = vadd.f32 %v4135_v25, %v576_v41 }
 0x141   : > { %v3370_v46 = vpop.f32.mrf.mxu0  ;;  %v3386_v47 = vpop.f32.mrf.mxu1 }
 0x142   : > { %v669_v48 = vpack.c.bf16 %v639_v42, %v638_v36  ;;  %v677_v49 = vpack.c.bf16 %v655_v43, %v654_v37  ;;  %v637_v50 = vmax.f32 %v513_v44, 0.0  ;;  %v653_v51 = vmax.f32 %v577_v45, 0.0 }
 0x143   : > { %v4146_v54 = vadd.f32 %v3370_v46, %v4135_v25  ;;  %v4149_v55 = vadd.f32 %v3386_v47, %v4135_v25  ;;  %v525_v56 = vpop.f32.mrf.mxu0  ;;  %v589_v57 = vpop.f32.mrf.mxu1 }
 0x144   : > { %v692_v58 = vshrl.u32 %v669_v48, 16  ;;  %v695_v59 = vshll.u32 %v669_v48, 16  ;;  %v748_v60 = vshrl.u32 %v677_v49, 16  ;;  %v751_v61 = vshll.u32 %v677_v49, 16 }
 0x145   : > { %v668_v63 = vpack.c.bf16 %v637_v50, %v636_v52  ;;  %v676_v0 = vpack.c.bf16 %v653_v51, %v652_v53  ;;  %v642_v1 = vmax.f32 %v4146_v54, 0.0  ;;  %v658_v2 = vmax.f32 %v4149_v55, 0.0  ;;  %v3371_v3 = vpop.f32.mrf.mxu0  ;;  %v3387_v4 = vpop.f32.mrf.mxu1 }
 0x146   : > { %v694_v5 = vrot.slane %v692_v58, 7  ;;  %v750_v6 = vrot.slane %v748_v60, 7  ;;  %v4160_v7 = vadd.f32 %v4135_v25, %v525_v56  ;;  %v4163_v8 = vadd.f32 %v4135_v25, %v589_v57 }
 0x147   : > { %v685_v9 = vshrl.u32 %v668_v63, 16  ;;  %v688_v10 = vshll.u32 %v668_v63, 16  ;;  %v741_v11 = vshrl.u32 %v676_v0, 16  ;;  %v744_v12 = vshll.u32 %v676_v0, 16  ;;  %v528_v13 = vpop.f32.mrf.mxu0  ;;  %v592_v14 = vpop.f32.mrf.mxu1 }
 0x148   : > { %v697_v15 = vor.u32 %v695_v59, %v694_v5  ;;  %v848_v16 = vsel %vm4153_vm4, %v694_v5, 0  ;;  %v753_v17 = vor.u32 %v751_v61, %v750_v6  ;;  %v856_v18 = vsel %vm4153_vm4, %v750_v6, 0 }
 0x149   : > { %v2984_v19 = vcombine.low %v848_v16, %v848_v16  ;;  %v3008_v20 = vcombine.low %v856_v18, %v856_v18  ;;  %v687_v21 = vrot.slane %v685_v9, 7  ;;  %v743_v22 = vrot.slane %v741_v11, 7  ;;  %v3374_v23 = vpop.f32.mrf.mxu0  ;;  %v3390_v24 = vpop.f32.mrf.mxu1 }
 0x14a   : > { %v832_v26 = vsel %vm4153_vm4, 0, %v697_v15  ;;  %v840_v27 = vsel %vm4153_vm4, 0, %v753_v17  ;;  %v640_v28 = vmax.f32 %v4160_v7, 0.0  ;;  %v656_v29 = vmax.f32 %v4163_v8, 0.0 }
 0x14b   : > { %v2982_v30 = vcombine.low %v832_v26, %v832_v26  ;;  %v2983_v31 = vcombine.high %v832_v26, %v832_v26  ;;  %1054 = vst.msk [vmem:[#allocation2 + $0x20] sm:$0x1] %vm866_vm1, %v2984_v19  ;;  %v3006_v32 = vcombine.low %v840_v27, %v840_v27  ;;  %v3007_v33 = vcombine.high %v840_v27, %v840_v27  ;;  %v541_v38 = vpop.f32.mrf.mxu0  ;;  %v605_v39 = vpop.f32.mrf.mxu1 }
 0x14c   : > { %1078 = vst.msk [vmem:[#allocation2 + $0x80] sm:$0x1] %vm866_vm1, %v3008_v20  ;;  %v690_v34 = vor.u32 %v688_v10, %v687_v21  ;;  %v847_v35 = vsel %vm4153_vm4, %v687_v21, 0  ;;  %v746_v36 = vor.u32 %v744_v12, %v743_v22  ;;  %v855_v37 = vsel %vm4153_vm4, %v743_v22, 0 }
 0x14d   : > { %1052 = vst.msk [vmem:[#allocation2 + $0x18] sm:$0xf] %vm863_vm0, %v2982_v30  ;;  %1053 = vst.msk [vmem:[#allocation2 + $0x1c] sm:$0xf] %vm863_vm0, %v2983_v31  ;;  %v2981_v40 = vcombine.low %v847_v35, %v847_v35  ;;  %v3005_v41 = vcombine.low %v855_v37, %v855_v37  ;;  %v537_v42 = vadd.f32 %v3371_v3, %v4135_v25  ;;  %v3375_v58 = vpop.f32.mrf.mxu0  ;;  %v3391_v59 = vpop.f32.mrf.mxu1 }
 0x14e   : > { %1076 = vst.msk [vmem:[#allocation2 + $0x78] sm:$0xf] %vm863_vm0, %v3006_v32  ;;  %1077 = vst.msk [vmem:[#allocation2 + $0x7c] sm:$0xf] %vm863_vm0, %v3007_v33  ;;  %v601_v43 = vadd.f32 %v3387_v4, %v4135_v25  ;;  %v831_v44 = vsel %vm4153_vm4, 0, %v690_v34  ;;  %v839_v45 = vsel %vm4153_vm4, 0, %v746_v36  ;;  %v529_v46 = vadd.f32 %v4135_v25, %v528_v13 }
 0x14f   : > { %v593_v47 = vadd.f32 %v4135_v25, %v592_v14  ;;  %v2979_v48 = vcombine.low %v831_v44, %v831_v44  ;;  %v2980_v49 = vcombine.high %v831_v44, %v831_v44  ;;  %1051 = vst.msk [vmem:[#allocation2 + $0x14] sm:$0x1] %vm866_vm1, %v2981_v40  ;;  %v3003_v50 = vcombine.low %v839_v45, %v839_v45  ;;  %v544_v54 = vpop.f32.mrf.mxu0 }
 0x150   : > { %v3004_v51 = vcombine.high %v839_v45, %v839_v45  ;;  %1075 = vst.msk [vmem:[#allocation2 + $0x74] sm:$0x1] %vm866_vm1, %v3005_v41  ;;  %v643_v52 = vmax.f32 %v537_v42, 0.0  ;;  %v659_v53 = vmax.f32 %v601_v43, 0.0  ;;  %v641_v56 = vmax.f32 %v529_v46, 0.0 }
 0x151   : > { %v657_v57 = vmax.f32 %v593_v47, 0.0  ;;  %1049 = vst.msk [vmem:[#allocation2 + $0xc] sm:$0xf] %vm863_vm0, %v2979_v48  ;;  %1050 = vst.msk [vmem:[#allocation2 + $0x10] sm:$0xf] %vm863_vm0, %v2980_v49  ;;  %v4200_v60 = vadd.f32 %v3374_v23, %v4135_v25  ;;  %v4203_v61 = vadd.f32 %v3390_v24, %v4135_v25  ;;  %v4206_v63 = vadd.f32 %v4135_v25, %v541_v38  ;;  %v3378_v37 = vpop.f32.mrf.mxu0 }
 0x152   : > { %1073 = vst.msk [vmem:[#allocation2 + $0x6c] sm:$0xf] %vm863_vm0, %v3003_v50  ;;  %1074 = vst.msk [vmem:[#allocation2 + $0x70] sm:$0xf] %vm863_vm0, %v3004_v51  ;;  %v671_v0 = vpack.c.bf16 %v643_v52, %v642_v1  ;;  %v679_v3 = vpack.c.bf16 %v659_v53, %v658_v2  ;;  %v670_v4 = vpack.c.bf16 %v641_v56, %v640_v28  ;;  %v608_v1 = vpop.f32.mrf.mxu1 }
 0x153   : > { %v678_v5 = vpack.c.bf16 %v657_v57, %v656_v29  ;;  %v646_v6 = vmax.f32 %v4200_v60, 0.0  ;;  %v662_v7 = vmax.f32 %v4203_v61, 0.0  ;;  %v644_v8 = vmax.f32 %v4206_v63, 0.0  ;;  %v557_v57 = vpop.f32.mrf.mxu0 }
 0x154   : > { %v4216_v9 = vadd.f32 %v4135_v25, %v605_v39  ;;  %v706_v10 = vshrl.u32 %v671_v0, 16  ;;  %v709_v11 = vshll.u32 %v671_v0, 16  ;;  %v762_v12 = vshrl.u32 %v679_v3, 16  ;;  %v3394_v50 = vpop.f32.mrf.mxu1 }
 0x155   : > { %v765_v13 = vshll.u32 %v679_v3, 16  ;;  %v699_v14 = vshrl.u32 %v670_v4, 16  ;;  %v702_v55 = vshll.u32 %v670_v4, 16  ;;  %v755_v2 = vshrl.u32 %v678_v5, 16 }
 0x156   : > { %v758_v15 = vshll.u32 %v678_v5, 16  ;;  %v708_v16 = vrot.slane %v706_v10, 7  ;;  %v764_v17 = vrot.slane %v762_v12, 7  ;;  %v553_v18 = vadd.f32 %v3375_v58, %v4135_v25 }
 0x157   : > { %v617_v19 = vadd.f32 %v3391_v59, %v4135_v25  ;;  %v701_v20 = vrot.slane %v699_v14, 7  ;;  %v757_v21 = vrot.slane %v755_v2, 7  ;;  %v545_v22 = vadd.f32 %v4135_v25, %v544_v54  ;;  %v3379_v14 = vpop.f32.mrf.mxu0 }
 0x158   : > { %v609_v23 = vadd.f32 %v4135_v25, %v608_v1  ;;  %v711_v24 = vor.u32 %v709_v11, %v708_v16  ;;  %v850_v26 = vsel %vm4153_vm4, %v708_v16, 0  ;;  %v767_v27 = vor.u32 %v765_v13, %v764_v17  ;;  %v621_v11 = vpop.f32.mrf.mxu1 }
 0x159   : > { %v858_v28 = vsel %vm4153_vm4, %v764_v17, 0  ;;  %v2990_v29 = vcombine.low %v850_v26, %v850_v26  ;;  %v704_v31 = vor.u32 %v702_v55, %v701_v20  ;;  %v849_v32 = vsel %vm4153_vm4, %v701_v20, 0 }
 0x15a   : > { %v3014_v30 = vcombine.low %v858_v28, %v858_v28  ;;  %v834_v33 = vsel %vm4153_vm4, 0, %v711_v24  ;;  %v842_v34 = vsel %vm4153_vm4, 0, %v767_v27  ;;  %v2987_v35 = vcombine.low %v849_v32, %v849_v32 }
 0x15b   : > { %v760_v36 = vor.u32 %v758_v15, %v757_v21  ;;  %v2988_v38 = vcombine.low %v834_v33, %v834_v33  ;;  %v2989_v39 = vcombine.high %v834_v33, %v834_v33  ;;  %1060 = vst.msk [vmem:[#allocation2 + $0x38] sm:$0x1] %vm866_vm1, %v2990_v29  ;;  %v3012_v40 = vcombine.low %v842_v34, %v842_v34 }
 0x15c   : > { %v3013_v41 = vcombine.high %v842_v34, %v842_v34  ;;  %1084 = vst.msk [vmem:[#allocation2 + $0x98] sm:$0x1] %vm866_vm1, %v3014_v30  ;;  %v833_v42 = vsel %vm4153_vm4, 0, %v704_v31  ;;  %1057 = vst.msk [vmem:[#allocation2 + $0x2c] sm:$0x1] %vm866_vm1, %v2987_v35  ;;  %v857_v44 = vsel %vm4153_vm4, %v757_v21, 0  ;;  %v4251_v60 = vadd.f32 %v3378_v37, %v4135_v25  ;;  %v3395_v21 = vpop.f32.mrf.mxu1  ;;  %v560_v35 = vpop.f32.mrf.mxu0 }
 0x15d   : > { %v841_v43 = vsel %vm4153_vm4, 0, %v760_v36  ;;  %v647_v45 = vmax.f32 %v553_v18, 0.0  ;;  %1058 = vst.msk [vmem:[#allocation2 + $0x30] sm:$0xf] %vm863_vm0, %v2988_v38  ;;  %1059 = vst.msk [vmem:[#allocation2 + $0x34] sm:$0xf] %vm863_vm0, %v2989_v39  ;;  %v2985_v46 = vcombine.low %v833_v42, %v833_v42  ;;  %v2986_v47 = vcombine.high %v833_v42, %v833_v42 }
 0x15e   : > { %1082 = vst.msk [vmem:[#allocation2 + $0x90] sm:$0xf] %vm863_vm0, %v3012_v40  ;;  %1083 = vst.msk [vmem:[#allocation2 + $0x94] sm:$0xf] %vm863_vm0, %v3013_v41  ;;  %v3009_v48 = vcombine.low %v841_v43, %v841_v43  ;;  %v3010_v49 = vcombine.high %v841_v43, %v841_v43  ;;  %v3011_v51 = vcombine.low %v857_v44, %v857_v44  ;;  %v663_v53 = vmax.f32 %v617_v19, 0.0  ;;  %v624_v40 = vpop.f32.mrf.mxu1 }
 0x15f   : > { %v673_v52 = vpack.c.bf16 %v647_v45, %v646_v6  ;;  %v645_v56 = vmax.f32 %v545_v22, 0.0  ;;  %1055 = vst.msk [vmem:[#allocation2 + $0x24] sm:$0xf] %vm863_vm0, %v2985_v46  ;;  %1056 = vst.msk [vmem:[#allocation2 + $0x28] sm:$0xf] %vm863_vm0, %v2986_v47  ;;  %v660_v58 = vmax.f32 %v4216_v9, 0.0  ;;  %v4259_v10 = vadd.f32 %v3394_v50, %v4135_v25 }
 0x160   : > { %1079 = vst.msk [vmem:[#allocation2 + $0x84] sm:$0xf] %vm863_vm0, %v3009_v48  ;;  %1080 = vst.msk [vmem:[#allocation2 + $0x88] sm:$0xf] %vm863_vm0, %v3010_v49  ;;  %v661_v59 = vmax.f32 %v609_v23, 0.0  ;;  %v681_v3 = vpack.c.bf16 %v663_v53, %v662_v7  ;;  %v4262_v9 = vadd.f32 %v4135_v25, %v557_v57  ;;  %v650_v1 = vmax.f32 %v4251_v60, 0.0 }
 0x161   : > { %1081 = vst.msk [vmem:[#allocation2 + $0x8c] sm:$0x1] %vm866_vm1, %v3011_v51  ;;  %v720_v0 = vshrl.u32 %v673_v52, 16  ;;  %v672_v4 = vpack.c.bf16 %v645_v56, %v644_v8  ;;  %v723_v5 = vshll.u32 %v673_v52, 16  ;;  %v622_v19 = vadd.f32 %v4135_v25, %v621_v11 }
 0x162   : > { %v680_v6 = vpack.c.bf16 %v661_v59, %v660_v58  ;;  %v776_v13 = vshrl.u32 %v681_v3, 16  ;;  %v779_v61 = vshll.u32 %v681_v3, 16  ;;  %v569_v20 = vadd.f32 %v3379_v14, %v4135_v25 }
 0x163   : > { %v722_v12 = vrot.slane %v720_v0, 7  ;;  %v713_v54 = vshrl.u32 %v672_v4, 16  ;;  %v716_v7 = vshll.u32 %v672_v4, 16  ;;  %v633_v44 = vadd.f32 %v3395_v21, %v4135_v25 }
 0x164   : > { %v769_v55 = vshrl.u32 %v680_v6, 16  ;;  %v772_v63 = vshll.u32 %v680_v6, 16  ;;  %v778_v15 = vrot.slane %v776_v13, 7  ;;  %v651_v43 = vmax.f32 %v569_v20, 0.0 }
 0x165   : > { %v725_v8 = vor.u32 %v723_v5, %v722_v12  ;;  %v852_v2 = vsel %vm4153_vm4, %v722_v12, 0  ;;  %v715_v16 = vrot.slane %v713_v54, 7  ;;  %v561_v48 = vadd.f32 %v4135_v25, %v560_v35 }
 0x166   : > { %v2996_v17 = vcombine.low %v852_v2, %v852_v2  ;;  %v771_v18 = vrot.slane %v769_v55, 7  ;;  %v781_v23 = vor.u32 %v779_v61, %v778_v15  ;;  %v860_v24 = vsel %vm4153_vm4, %v778_v15, 0 }
 0x167   : > { %v836_v22 = vsel %vm4153_vm4, 0, %v725_v8  ;;  %v718_v26 = vor.u32 %v716_v7, %v715_v16  ;;  %v3020_v29 = vcombine.low %v860_v24, %v860_v24  ;;  %v851_v30 = vsel %vm4153_vm4, %v715_v16, 0 }
 0x168   : > { %v2994_v27 = vcombine.low %v836_v22, %v836_v22  ;;  %v2995_v28 = vcombine.high %v836_v22, %v836_v22  ;;  %1066 = vst.msk [vmem:[#allocation2 + $0x50] sm:$0x1] %vm866_vm1, %v2996_v17  ;;  %v844_v31 = vsel %vm4153_vm4, 0, %v781_v23  ;;  %v2993_v33 = vcombine.low %v851_v30, %v851_v30 }
 0x169   : > { %v835_v32 = vsel %vm4153_vm4, 0, %v718_v26  ;;  %v774_v34 = vor.u32 %v772_v63, %v771_v18  ;;  %v3018_v36 = vcombine.low %v844_v31, %v844_v31  ;;  %v3019_v37 = vcombine.high %v844_v31, %v844_v31  ;;  %1090 = vst.msk [vmem:[#allocation2 + $0xb0] sm:$0x1] %vm866_vm1, %v3020_v29 }
 0x16a   : > { %1064 = vst.msk [vmem:[#allocation2 + $0x48] sm:$0xf] %vm863_vm0, %v2994_v27  ;;  %1065 = vst.msk [vmem:[#allocation2 + $0x4c] sm:$0xf] %vm863_vm0, %v2995_v28  ;;  %v2991_v38 = vcombine.low %v835_v32, %v835_v32  ;;  %v2992_v39 = vcombine.high %v835_v32, %v835_v32  ;;  %v859_v42 = vsel %vm4153_vm4, %v771_v18, 0  ;;  %v666_v49 = vmax.f32 %v4259_v10, 0.0 }
 0x16b   : > { %1063 = vst.msk [vmem:[#allocation2 + $0x44] sm:$0x1] %vm866_vm1, %v2993_v33  ;;  %v843_v41 = vsel %vm4153_vm4, 0, %v774_v34  ;;  %v3017_v47 = vcombine.low %v859_v42, %v859_v42  ;;  %v675_v50 = vpack.c.bf16 %v651_v43, %v650_v1  ;;  %v667_v51 = vmax.f32 %v633_v44, 0.0 }
 0x16c   : > { %1088 = vst.msk [vmem:[#allocation2 + $0xa8] sm:$0xf] %vm863_vm0, %v3018_v36  ;;  %1089 = vst.msk [vmem:[#allocation2 + $0xac] sm:$0xf] %vm863_vm0, %v3019_v37  ;;  %v3015_v45 = vcombine.low %v843_v41, %v843_v41  ;;  %v3016_v46 = vcombine.high %v843_v41, %v843_v41  ;;  %v625_v52 = vadd.f32 %v4135_v25, %v624_v40  ;;  %v648_v53 = vmax.f32 %v4262_v9, 0.0 }
 0x16d   : > { %1061 = vst.msk [vmem:[#allocation2 + $0x3c] sm:$0xf] %vm863_vm0, %v2991_v38  ;;  %1062 = vst.msk [vmem:[#allocation2 + $0x40] sm:$0xf] %vm863_vm0, %v2992_v39  ;;  %v649_v56 = vmax.f32 %v561_v48, 0.0  ;;  %v664_v57 = vmax.f32 %v622_v19, 0.0  ;;  %v683_v59 = vpack.c.bf16 %v667_v51, %v666_v49 }
 0x16e   : > { %1085 = vst.msk [vmem:[#allocation2 + $0x9c] sm:$0xf] %vm863_vm0, %v3015_v45  ;;  %1086 = vst.msk [vmem:[#allocation2 + $0xa0] sm:$0xf] %vm863_vm0, %v3016_v46  ;;  %v734_v58 = vshrl.u32 %v675_v50, 16  ;;  %v665_v60 = vmax.f32 %v625_v52, 0.0 }
 0x16f   : > { %1087 = vst.msk [vmem:[#allocation2 + $0xa4] sm:$0x1] %vm866_vm1, %v3017_v47  ;;  %v674_v0 = vpack.c.bf16 %v649_v56, %v648_v53  ;;  %v737_v4 = vshll.u32 %v675_v50, 16  ;;  %v790_v5 = vshrl.u32 %v683_v59, 16  ;;  %v793_v10 = vshll.u32 %v683_v59, 16 }
 0x170   : > { %v736_v3 = vrot.slane %v734_v58, 7  ;;  %v682_v6 = vpack.c.bf16 %v665_v60, %v664_v57 }
 0x171   : > { %v727_v25 = vshrl.u32 %v674_v0, 16  ;;  %v792_v13 = vrot.slane %v790_v5, 7  ;;  %v730_v14 = vshll.u32 %v674_v0, 16 }
 0x172   : > { %v739_v11 = vor.u32 %v737_v4, %v736_v3  ;;  %v854_v12 = vsel %vm4153_vm4, %v736_v3, 0  ;;  %v783_v54 = vshrl.u32 %v682_v6, 16  ;;  %v786_v61 = vshll.u32 %v682_v6, 16 }
 0x173   : > { %v3002_v1 = vcombine.low %v854_v12, %v854_v12  ;;  %v729_v9 = vrot.slane %v727_v25, 7  ;;  %v795_v55 = vor.u32 %v793_v10, %v792_v13  ;;  %v862_v63 = vsel %vm4153_vm4, %v792_v13, 0 }
 0x174   : > { %v838_v7 = vsel %vm4153_vm4, 0, %v739_v11  ;;  %v785_v8 = vrot.slane %v783_v54, 7  ;;  %v3026_v16 = vcombine.low %v862_v63, %v862_v63 }
 0x175   : > { %v3000_v2 = vcombine.low %v838_v7, %v838_v7  ;;  %v3001_v15 = vcombine.high %v838_v7, %v838_v7  ;;  %1072 = vst.msk [vmem:[#allocation2 + $0x68] sm:$0x1] %vm866_vm1, %v3002_v1  ;;  %v732_v17 = vor.u32 %v730_v14, %v729_v9  ;;  %v846_v18 = vsel %vm4153_vm4, 0, %v795_v55 }
 0x176   : > { %v853_v19 = vsel %vm4153_vm4, %v729_v9, 0  ;;  %v788_v20 = vor.u32 %v786_v61, %v785_v8  ;;  %v861_v21 = vsel %vm4153_vm4, %v785_v8, 0  ;;  %v3024_v22 = vcombine.low %v846_v18, %v846_v18  ;;  %1096 = vst.msk [vmem:[#allocation2 + $0xc8] sm:$0x1] %vm866_vm1, %v3026_v16 }
 0x177   : > { %1070 = vst.msk [vmem:[#allocation2 + $0x60] sm:$0xf] %vm863_vm0, %v3000_v2  ;;  %1071 = vst.msk [vmem:[#allocation2 + $0x64] sm:$0xf] %vm863_vm0, %v3001_v15  ;;  %v3025_v23 = vcombine.high %v846_v18, %v846_v18  ;;  %v837_v24 = vsel %vm4153_vm4, 0, %v732_v17  ;;  %v2999_v26 = vcombine.low %v853_v19, %v853_v19  ;;  %v3023_v30 = vcombine.low %v861_v21, %v861_v21 }
 0x178   : > { %v2997_v27 = vcombine.low %v837_v24, %v837_v24  ;;  %v2998_v28 = vcombine.high %v837_v24, %v837_v24  ;;  %v845_v29 = vsel %vm4153_vm4, 0, %v788_v20  ;;  %1094 = vst.msk [vmem:[#allocation2 + $0xc0] sm:$0xf] %vm863_vm0, %v3024_v22 }
 0x179   : > { %1095 = vst.msk [vmem:[#allocation2 + $0xc4] sm:$0xf] %vm863_vm0, %v3025_v23  ;;  %v3021_v31 = vcombine.low %v845_v29, %v845_v29  ;;  %v3022_v32 = vcombine.high %v845_v29, %v845_v29 }
 0x17a   : > { %1069 = vst.msk [vmem:[#allocation2 + $0x5c] sm:$0x1] %vm866_vm1, %v2999_v26  ;;  %1093 = vst.msk [vmem:[#allocation2 + $0xbc] sm:$0x1] %vm866_vm1, %v3023_v30 }
 0x17b   : > { %1067 = vst.msk [vmem:[#allocation2 + $0x54] sm:$0xf] %vm863_vm0, %v2997_v27  ;;  %1068 = vst.msk [vmem:[#allocation2 + $0x58] sm:$0xf] %vm863_vm0, %v2998_v28 }
 0x17c   : > { %1091 = vst.msk [vmem:[#allocation2 + $0xb4] sm:$0xf] %vm863_vm0, %v3021_v31  ;;  %1092 = vst.msk [vmem:[#allocation2 + $0xb8] sm:$0xf] %vm863_vm0, %v3022_v32 }
 0x17d PF: > { %v3674_v62 = vld [vmem:[#allocation6 + $0x18] sm:$0xff]   ;;  %s3210_s15 = smul.u32 48, %s3868_s24  ;;  %v3675_v33 = vld [vmem:[#allocation6 + $0x8] sm:$0xff]   ;;  %v3676_v34 = vld [vmem:[#allocation6 + $0x10] sm:$0xff]   ;;  %vm1117_vm5 = vsmask.f32 3328 }
 0x17e   : > { %3396 = vmatprep.subr.bf16.mxu0 %v3674_v62  ;;  %3408 = vmatprep.subr.bf16.mxu1 %v3675_v33  ;;  %v3677_v35 = vld [vmem:[#allocation6] sm:$0xff]   ;;  %vm1118_vm6 = vsmask.f32 7440  ;;  %vm1245_vm7 = vcmask 261120   ;;  %v4343_v48 = vld [vmem:[#allocation6 + $0x28] sm:$0xff]   ;;  %v3684_v53 = vld [vmem:[#allocation6 + $0x38] sm:$0xff]  }
 0x17f   : > { %3397 = vmatpush3.bf16.msra.mxu0 %v3674_v62  ;;  %3409 = vmatpush3.bf16.msra.mxu1 %v3675_v33  ;;  %s4329_s6 = scalar_lea.vmem [#allocation2], %s3210_s15  ;;  %vm4356_vm8 = vmor %vm1117_vm5, %vm1118_vm6  ;;  %vm1444_vm9 = vcmask 1042432   ;;  %v3685_v15 = vld [vmem:[#allocation6 + $0x30] sm:$0xff]   ;;  %vm1445_vm10 = vcmask 1046532   ;;  %s3212_s12 = sshll.u32 %s3868_s24, 5 }
 0x180   : > { %3398 = vmatprep.subr.bf16.mxu0 %v3676_v34  ;;  %3410 = vmatprep.subr.bf16.mxu1 %v3677_v35  ;;  %vm4412_vm11 = vmor %vm1444_vm9, %vm1445_vm10  ;;  %s2648_s14 = scalar_lea.vmem %s4070_s17, %s3212_s12 [#allocation3]  ;;  %s4830_s17 = sld [smem:[#allocation13_spill]] }
 0x181   : > { %s3221_s30 = sshll.u32 %s3868_s24, 3  ;;  %s4831_s15 = sld [smem:[#allocation15_spill]] }
 0x182   : > { %s4832_s18 = sld [smem:[#allocation24_spill]]  ;;  %s4719_s10 = scalar_lea.sflag [#allocation5], %s269_s5 }
 0x183   : > { %v1101_v36 = vld [vmem:[%s4329_s6] sm:$0xf]  ;;  %v4333_v37 = vld [vmem:[%s4329_s6 + $0x4] sm:$0xf]  ;;  %v4336_v38 = vld [vmem:[%s4329_s6 + $0x8] sm:$0x1]  ;;  %3399 = vmatpush3.bf16.msra.mxu0 %v3676_v34  ;;  %3411 = vmatpush3.bf16.msra.mxu1 %v3677_v35 }
 0x184   : > { %v1121_v39 = vshrl.u32 %v1101_v36, 16  ;;  %v1124_v40 = vshll.u32 %v1101_v36, 16  ;;  %v1130_v41 = vshll.u32 %v4333_v37, 16  ;;  %v1134_v42 = vshrl.u32 %v4333_v37, 16  ;;  %v1103_v52 = vld [vmem:[%s4329_s6 + $0xc] sm:$0xf]  ;;  %3420 = vmatprep.subr.bf16.mxu0 %v4343_v48  ;;  %3432 = vmatprep.subr.bf16.mxu1 %v3684_v53 }
 0x185   : > { %v1140_v43 = vshll.u32 %v4336_v38, 16  ;;  %v1452_v46 = vrot.slane %v4336_v38, 5  ;;  %v3040_v47 = vcombine.low %v1101_v36, %v4333_v37  ;;  %v4349_v57 = vld [vmem:[%s4329_s6 + $0x10] sm:$0xf]  ;;  %v4352_v58 = vld [vmem:[%s4329_s6 + $0x14] sm:$0x1] }
 0x186   : > { %v1123_v44 = vrot.slane %v1121_v39, 4  ;;  %v1126_v45 = vrot.slane %v1124_v40, 5  ;;  %v1132_v49 = vrot.slane %v1130_v41, 5  ;;  %v1136_v50 = vrot.slane %v1134_v42, 4  ;;  %v1105_v10 = vld [vmem:[%s4329_s6 + $0x18] sm:$0xf] }
 0x187   : > { %v1142_v51 = vrot.slane %v1140_v43, 5  ;;  %3412 = vmatprep.mubr.msk.bf16.mxu1 %vm1245_vm7, %v3040_v47  ;;  %v1145_v59 = vshrl.u32 %v1103_v52, 16  ;;  %v1148_v60 = vshll.u32 %v1103_v52, 16  ;;  %v1154_v4 = vshll.u32 %v4349_v57, 16  ;;  %v4366_v54 = vld [vmem:[%s4329_s6 + $0x1c] sm:$0xf] }
 0x188   : > { %v1127_v56 = vor.u32 %v1126_v45, %v1123_v44  ;;  %v1137_v3 = vor.u32 %v1136_v50, %v1132_v49  ;;  %v1158_v5 = vshrl.u32 %v4349_v57, 16  ;;  %v1164_v6 = vshll.u32 %v4352_v58, 16  ;;  %v4369_v7 = vld [vmem:[%s4329_s6 + $0x20] sm:$0x1]  ;;  %v1107_v20 = vld [vmem:[%s4329_s6 + $0x24] sm:$0xf]  ;;  %s4833_s7 = smov %s4832_s18 }
 0x189   : > { %v1147_v11 = vrot.slane %v1145_v59, 4  ;;  %v1150_v12 = vrot.slane %v1148_v60, 5  ;;  %v1456_v13 = vrot.slane %v4349_v57, 5  ;;  %v1156_v9 = vrot.slane %v1154_v4, 5  ;;  %v4379_v21 = vld [vmem:[%s4329_s6 + $0x28] sm:$0xf] }
 0x18a   : > { %v1128_v25 = vrot.slane %v1127_v56, 4  ;;  %v1138_v1 = vrot.slane %v1137_v3, 4  ;;  %v1160_v14 = vrot.slane %v1158_v5, 4  ;;  %v1166_v61 = vrot.slane %v1164_v6, 5  ;;  %v4385_v27 = vld [vmem:[%s4329_s6 + $0x2c] sm:$0x1] }
 0x18b   : > { %v1151_v63 = vor.u32 %v1150_v12, %v1147_v11  ;;  %v1459_v8 = vrot.slane %v4352_v58, 5  ;;  %v3041_v2 = vcombine.low %v1103_v52, %v4349_v57  ;;  %v1169_v18 = vshrl.u32 %v1105_v10, 16  ;;  %v3682_v35 = vld [vmem:[#allocation6 + $0x20] sm:$0xff]   ;;  %v1432_v42 = vld [vmem:[%s4329_s6] sm:$0xe]  ;;  %v3687_v43 = vld [vmem:[%s4329_s6 + $0xc] sm:$0xff]  }
 0x18c   : > { %v1133_v55 = vsel %vm4356_vm8, %v1128_v25, %v1132_v49  ;;  %v1143_v16 = vsel %vm4356_vm8, %v1138_v1, %v1142_v51  ;;  %v1161_v17 = vor.u32 %v1160_v14, %v1156_v9  ;;  %v1172_v19 = vshll.u32 %v1105_v10, 16  ;;  %v1433_v56 = vld [vmem:[%s4329_s6 + $0xc] sm:$0xe]  ;;  %v4406_v25 = vld [vmem:[#allocation6 + $0x48] sm:$0xff]   ;;  %s3205_s21 = sshll.u32 %s4830_s17, 5  ;;  %p4834_p3 = scmp.ne.s32.totalorder %s4831_s15, 0 }
 0x18d   : > { %v3030_v22 = vcombine.low %v1133_v55, %v1143_v16  ;;  %v1152_v23 = vrot.slane %v1151_v63, 4  ;;  %3413 = vmatmul.mubr.msk.bf16.vlgmr.msra.gmra.mxu1 %vm1245_vm7, %v3041_v2  ;;  %v1178_v24 = vshll.u32 %v4366_v54, 16  ;;  %v1182_v26 = vshrl.u32 %v4366_v54, 16  ;;  %v1434_v2 = vld [vmem:[%s4329_s6 + $0x18] sm:$0xe]  ;;  %s2829_s8 = sadd.s32 %s3221_s30, %s3205_s21 }
 0x18e   : > { %v1162_v28 = vrot.slane %v1161_v17, 4  ;;  %v1171_v29 = vrot.slane %v1169_v18, 4  ;;  %v1174_v30 = vrot.slane %v1172_v19, 5  ;;  %v1188_v31 = vshll.u32 %v4369_v7, 16  ;;  %3433 = vmatpush3.bf16.msra.mxu1 %v3684_v53  ;;  %v3688_v18 = vld [vmem:[%s4329_s6 + $0x18] sm:$0xff]   ;;  %s3206_s24 = sshll.u32 %s2829_s8, 6 }
 0x18f   : > { %3400 = vmatprep.mubr.msk.bf16.mxu0 %vm1245_vm7, %v3030_v22  ;;  %v1157_v32 = vsel %vm4356_vm8, %v1152_v23, %v1156_v9  ;;  %v1180_v62 = vrot.slane %v1178_v24, 5  ;;  %v1184_v33 = vrot.slane %v1182_v26, 4  ;;  %v3042_v34 = vcombine.low %v1105_v10, %v4366_v54  ;;  %3434 = vmatprep.subr.bf16.mxu1 %v3685_v15  ;;  %v1435_v22 = vld [vmem:[%s4329_s6 + $0x24] sm:$0xe]  ;;  %s4711_s9 = scalar_lea.hbm %s4832_s18, %s3206_s24 }
 0x190   : > { %v1167_v36 = vsel %vm4356_vm8, %v1162_v28, %v1166_v61  ;;  %v1175_v39 = vor.u32 %v1174_v30, %v1171_v29  ;;  %v1190_v40 = vrot.slane %v1188_v31, 5  ;;  %v1193_v41 = vshrl.u32 %v1107_v20, 16  ;;  %v3690_v28 = vld [vmem:[%s4329_s6 + $0x24] sm:$0xff]   ;;  %v3692_v31 = vld [vmem:[#allocation6 + $0x58] sm:$0xff]  }
 0x191   : > { %v3031_v44 = vcombine.low %v1157_v32, %v1167_v36  ;;  %v1185_v45 = vor.u32 %v1184_v33, %v1180_v62  ;;  %3416 = vmatprep.mubr.msk.bf16.mxu1 %vm1245_vm7, %v3042_v34  ;;  %v1196_v47 = vshll.u32 %v1107_v20, 16  ;;  %v1202_v49 = vshll.u32 %v4379_v21, 16  ;;  %v3693_v33 = vld [vmem:[#allocation6 + $0x50] sm:$0xff]  }
 0x192   : > { %v1176_v50 = vrot.slane %v1175_v39, 4  ;;  %v1195_v51 = vrot.slane %v1193_v41, 4  ;;  %v1206_v52 = vshrl.u32 %v4379_v21, 16  ;;  %v1212_v53 = vshll.u32 %v4385_v27, 16  ;;  %3435 = vmatpush3.bf16.msra.mxu1 %v3685_v15 }
 0x193   : > { %3401 = vmatmul.mubr.msk.bf16.vlgmr.msra.gmra.mxu0 %vm1245_vm7, %v3031_v44  ;;  %v1186_v59 = vrot.slane %v1185_v45, 4  ;;  %v1198_v60 = vrot.slane %v1196_v47, 5  ;;  %v1204_v3 = vrot.slane %v1202_v49, 5  ;;  %v3043_v4 = vcombine.low %v1107_v20, %v4379_v21  ;;  %3456 = vmatprep.subr.bf16.mxu1 %v3692_v31  ;;  %v3087_v49 = vld [vmem:[%s4329_s6 + $0x18] sm:$0xf] }
 0x194   : > { %3421 = vmatpush3.bf16.msra.mxu0 %v4343_v48  ;;  %v1181_v5 = vsel %vm4356_vm8, %v1176_v50, %v1180_v62  ;;  %v1208_v6 = vrot.slane %v1206_v52, 4  ;;  %v1214_v10 = vrot.slane %v1212_v53, 5  ;;  %v3050_v1 = vrot.slane %v1432_v42, 9 }
 0x195   : > { %v1191_v11 = vsel %vm4356_vm8, %v1186_v59, %v1190_v40  ;;  %3422 = vmatprep.subr.bf16.mxu0 %v3682_v35  ;;  %v1199_v12 = vor.u32 %v1198_v60, %v1195_v51  ;;  %3417 = vmatmul.mubr.msk.bf16.gmra.mxu1 %vm1245_vm7, %v3043_v4  ;;  %v1449_v9 = vrot.slane %v4333_v37, 5  ;;  %v3051_v55 = vrot.slane %v1433_v56, 9  ;;  %v3691_v51 = vld [vmem:[%s4329_s6 + $0x30] sm:$0xff]   ;;  %v3088_v59 = vld [vmem:[%s4329_s6 + $0x1c] sm:$0xf] }
 0x196   : > { %v3032_v14 = vcombine.low %v1181_v5, %v1191_v11  ;;  %v1209_v61 = vor.u32 %v1208_v6, %v1204_v3  ;;  %v1458_v63 = vrot.slane %v1456_v13, 4  ;;  %3436 = vmatprep.mubr.msk.bf16.mxu1 %vm1245_vm7, %v3687_v43  ;;  %v3052_v19 = vrot.slane %v1434_v2, 9 }
 0x197   : > { %v1200_v15 = vrot.slane %v1199_v12, 4  ;;  %v1450_v16 = vsel %vm4412_vm11, %v3050_v1, %v1449_v9  ;;  %v1451_v17 = vrot.slane %v1449_v9, 4  ;;  %v1463_v20 = vrot.slane %v4366_v54, 5  ;;  %v3106_v9 = vld [vmem:[%s4329_s6 + $0xc] sm:$0xe] }
 0x198   : > { %3404 = vmatprep.mubr.msk.bf16.mxu0 %vm1245_vm7, %v3032_v14  ;;  %v1210_v37 = vrot.slane %v1209_v61, 4  ;;  %3423 = vmatpush3.bf16.msra.mxu0 %v3682_v35  ;;  %v1466_v26 = vrot.slane %v4369_v7, 5  ;;  %v3053_v62 = vrot.slane %v1435_v22, 9  ;;  %v1470_v38 = vrot.slane %v4379_v21, 5  ;;  %v3084_v21 = vld [vmem:[%s4329_s6 + $0xc] sm:$0xf] }
 0x199   : > { %v1205_v23 = vsel %vm4356_vm8, %v1200_v15, %v1204_v3  ;;  %v1453_v24 = vsel %vm4412_vm11, %v1451_v17, %v1452_v46  ;;  %3444 = vmatprep.subr.bf16.mxu0 %v4406_v25  ;;  %v1465_v54 = vrot.slane %v1463_v20, 4  ;;  %v1473_v46 = vrot.slane %v4385_v27, 5  ;;  %v3089_v3 = vld [vmem:[%s4329_s6 + $0x20] sm:$0x1]  ;;  %v3107_v14 = vld [vmem:[%s4329_s6 + $0x18] sm:$0xe] }
 0x19a   : > { %v1215_v29 = vsel %vm4356_vm8, %v1210_v37, %v1214_v10  ;;  %v3054_v30 = vcombine.low %v1450_v16, %v1453_v24  ;;  %v1457_v7 = vsel %vm4412_vm11, %v3051_v55, %v1456_v13  ;;  %v1460_v34 = vsel %vm4412_vm11, %v1458_v63, %v1459_v8  ;;  %v4460_v13 = vld [vmem:[%s4329_s6 + $0x10] sm:$0xf]  ;;  %v4463_v8 = vld [vmem:[%s4329_s6 + $0x14] sm:$0x1]  ;;  %v3689_v61 = vld [vmem:[#allocation6 + $0x40] sm:$0xff]  }
 0x19b   : > { %v3033_v32 = vcombine.low %v1205_v23, %v1215_v29  ;;  %v1464_v35 = vsel %vm4412_vm11, %v3052_v19, %v1463_v20  ;;  %v1467_v36 = vsel %vm4412_vm11, %v1465_v54, %v1466_v26  ;;  %v4457_v57 = vsel %vm4412_vm11, %v3053_v62, %v1470_v38  ;;  %v3090_v24 = vld [vmem:[%s4329_s6 + $0x24] sm:$0xf]  ;;  %v3696_v26 = vld [vmem:[#allocation6 + $0x78] sm:$0xff]  }
 0x19c   : > { %v1472_v58 = vrot.slane %v1470_v38, 4  ;;  %v1736_v27 = vshrl.u32 %v3084_v21, 16  ;;  %v1739_v39 = vshll.u32 %v3084_v21, 16  ;;  %v1745_v40 = vshll.u32 %v4460_v13, 16  ;;  %v3093_v21 = vld [vmem:[%s4329_s6 + $0x30] sm:$0xf] }
 0x19d   : > { %3405 = vmatmul.mubr.msk.bf16.gmra.mxu0 %vm1245_vm7, %v3033_v32  ;;  %3437 = vmatmul.mubr.msk.bf16.vlgmr.msra.gmra.mxu1 %vm1245_vm7, %v3688_v18  ;;  %v1749_v41 = vshrl.u32 %v4460_v13, 16  ;;  %v1755_v42 = vshll.u32 %v4463_v8, 16  ;;  %v3055_v43 = vcombine.low %v1457_v7, %v1460_v34  ;;  %v3056_v44 = vcombine.low %v1464_v35, %v1467_v36 }
 0x19e   : > { %3424 = vmatprep.mubr.msk.bf16.mxu0 %vm1245_vm7, %v3054_v30  ;;  %3440 = vmatprep.mubr.msk.bf16.mxu1 %vm1245_vm7, %v3690_v28  ;;  %v4472_v45 = vsel %vm4412_vm11, %v1472_v58, %v1473_v46  ;;  %v1738_v47 = vrot.slane %v1736_v27, 4  ;;  %v1741_v52 = vrot.slane %v1739_v39, 5  ;;  %v1747_v53 = vrot.slane %v1745_v40, 5  ;;  %v4493_v30 = vld [vmem:[#allocation6 + $0x68] sm:$0xff]   ;;  %v3091_v46 = vld [vmem:[%s4329_s6 + $0x28] sm:$0xf] }
 0x19f   : > { %3457 = vmatpush3.bf16.msra.mxu1 %v3692_v31  ;;  %v3057_v50 = vcombine.low %v4457_v57, %v4472_v45  ;;  %v1751_v56 = vrot.slane %v1749_v41, 4  ;;  %v1757_v60 = vrot.slane %v1755_v42, 5  ;;  %v1760_v4 = vshrl.u32 %v3087_v49, 16  ;;  %v4509_v39 = vld [vmem:[%s4329_s6 + $0x34] sm:$0xf] }
 0x1a0   : > { %3458 = vmatprep.subr.bf16.mxu1 %v3693_v33  ;;  %v1763_v5 = vshll.u32 %v3087_v49, 16  ;;  %v1769_v6 = vshll.u32 %v3088_v59, 16  ;;  %v1742_v10 = vor.u32 %v1741_v52, %v1738_v47  ;;  %v1773_v12 = vshrl.u32 %v3088_v59, 16  ;;  %v4512_v40 = vld [vmem:[%s4329_s6 + $0x38] sm:$0x1]  ;;  %v3697_v47 = vld [vmem:[#allocation6 + $0x70] sm:$0xff]  }
 0x1a1   : > { %v1752_v11 = vor.u32 %v1751_v56, %v1747_v53  ;;  %v1779_v1 = vshll.u32 %v3089_v3, 16  ;;  %v1762_v55 = vrot.slane %v1760_v4, 4  ;;  %v3110_v15 = vrot.slane %v3106_v9, 9  ;;  %v3108_v56 = vld [vmem:[%s4329_s6 + $0x24] sm:$0xe] }
 0x1a2   : > { %v1765_v63 = vrot.slane %v1763_v5, 5  ;;  %v1771_v2 = vrot.slane %v1769_v6, 5  ;;  %v1743_v16 = vrot.slane %v1742_v10, 4  ;;  %v1775_v18 = vrot.slane %v1773_v12, 4  ;;  %v3109_v12 = vld [vmem:[%s4329_s6 + $0x30] sm:$0xe] }
 0x1a3   : > { %3459 = vmatpush3.bf16.msra.mxu1 %v3693_v33  ;;  %v1753_v17 = vrot.slane %v1752_v11, 4  ;;  %v1781_v19 = vrot.slane %v1779_v1, 5  ;;  %v1963_v20 = vrot.slane %v4460_v13, 5  ;;  %v1966_v22 = vrot.slane %v4463_v8, 5  ;;  %v4499_v33 = vld [vmem:[%s4329_s6 + $0x2c] sm:$0x1] }
 0x1a4   : > { %v1766_v37 = vor.u32 %v1765_v63, %v1762_v55  ;;  %v3111_v23 = vrot.slane %v3107_v14, 9  ;;  %v1748_v28 = vsel %vm4356_vm8, %v1743_v16, %v1747_v53  ;;  %v1776_v54 = vor.u32 %v1775_v18, %v1771_v2  ;;  %3480 = vmatprep.subr.bf16.mxu1 %v3696_v26 }
 0x1a5   : > { %3425 = vmatmul.mubr.msk.bf16.vlgmr.msra.gmra.mxu0 %vm1245_vm7, %v3055_v43  ;;  %3441 = vmatmul.mubr.msk.bf16.gmra.mxu1 %vm1245_vm7, %v3691_v51  ;;  %v1758_v29 = vsel %vm4356_vm8, %v1753_v17, %v1757_v60  ;;  %v1970_v31 = vrot.slane %v3088_v59, 5  ;;  %v1965_v38 = vrot.slane %v1963_v20, 4  ;;  %v1973_v36 = vrot.slane %v3089_v3, 5 }
 0x1a6   : > { %3445 = vmatpush3.bf16.msra.mxu0 %v4406_v25  ;;  %3428 = vmatprep.mubr.msk.bf16.mxu0 %vm1245_vm7, %v3056_v44  ;;  %v3096_v32 = vcombine.low %v1748_v28, %v1758_v29  ;;  %v1767_v62 = vrot.slane %v1766_v37, 4  ;;  %v1964_v25 = vsel %vm4412_vm11, %v3110_v15, %v1963_v20  ;;  %v1777_v7 = vrot.slane %v1776_v54, 4  ;;  %v3144_v20 = vld [vmem:[%s4329_s6 + $0x18] sm:$0xf] }
 0x1a7   : > { %3446 = vmatprep.subr.bf16.mxu0 %v3689_v61  ;;  %v1971_v34 = vsel %vm4412_vm11, %v3111_v23, %v1970_v31  ;;  %v1972_v35 = vrot.slane %v1970_v31, 4  ;;  %v1967_v13 = vsel %vm4412_vm11, %v1965_v38, %v1966_v22  ;;  %v1784_v8 = vshrl.u32 %v3090_v24, 16  ;;  %v3695_v23 = vld [vmem:[#allocation6 + $0x60] sm:$0xff]  }
 0x1a8   : > { %v1772_v58 = vsel %vm4356_vm8, %v1767_v62, %v1771_v2  ;;  %v1787_v27 = vshll.u32 %v3090_v24, 16  ;;  %v1782_v41 = vsel %vm4356_vm8, %v1777_v7, %v1781_v19  ;;  %v3114_v42 = vcombine.low %v1964_v25, %v1967_v13  ;;  %v4541_v62 = vld [vmem:[%s4329_s6 + $0x1c] sm:$0xf]  ;;  %v4556_v13 = vld [vmem:[#allocation6 + $0x88] sm:$0xff]  }
 0x1a9   : > { %v1974_v43 = vsel %vm4412_vm11, %v1972_v35, %v1973_v36  ;;  %v1793_v44 = vshll.u32 %v3091_v46, 16  ;;  %v3097_v49 = vcombine.low %v1772_v58, %v1782_v41  ;;  %v1786_v52 = vrot.slane %v1784_v8, 4  ;;  %v4559_v8 = vld [vmem:[%s4329_s6 + $0x28] sm:$0xf] }
 0x1aa   : > { %3447 = vmatpush3.bf16.msra.mxu0 %v3689_v61  ;;  %v3115_v51 = vcombine.low %v1971_v34, %v1974_v43  ;;  %v1789_v53 = vrot.slane %v1787_v27, 5  ;;  %3460 = vmatprep.mubr.msk.bf16.mxu1 %vm1245_vm7, %v3114_v42  ;;  %v1797_v60 = vshrl.u32 %v3091_v46, 16  ;;  %v1803_v3 = vshll.u32 %v4499_v33, 16  ;;  %v3147_v34 = vld [vmem:[%s4329_s6 + $0x24] sm:$0xf] }
 0x1ab   : > { %3468 = vmatprep.subr.bf16.mxu0 %v4493_v30  ;;  %v1795_v59 = vrot.slane %v1793_v44, 5  ;;  %v1808_v4 = vshrl.u32 %v3093_v21, 16  ;;  %v1811_v6 = vshll.u32 %v3093_v21, 16  ;;  %v1817_v10 = vshll.u32 %v4509_v39, 16  ;;  %v4565_v42 = vld [vmem:[%s4329_s6 + $0x2c] sm:$0x1] }
 0x1ac   : > { %v1790_v5 = vor.u32 %v1789_v53, %v1786_v52  ;;  %v1821_v11 = vshrl.u32 %v4509_v39, 16  ;;  %v1799_v1 = vrot.slane %v1797_v60, 4  ;;  %v1805_v9 = vrot.slane %v1803_v3, 5 }
 0x1ad   : > { %3429 = vmatmul.mubr.msk.bf16.gmra.mxu0 %vm1245_vm7, %v3057_v50  ;;  %3461 = vmatmul.mubr.msk.bf16.vlgmr.msra.gmra.mxu1 %vm1245_vm7, %v3115_v51  ;;  %v1810_v14 = vrot.slane %v1808_v4, 4  ;;  %v1827_v61 = vshll.u32 %v4512_v40, 16  ;;  %v1813_v45 = vrot.slane %v1811_v6, 5  ;;  %v1819_v50 = vrot.slane %v1817_v10, 5  ;;  %v3150_v4 = vld [vmem:[%s4329_s6 + $0x30] sm:$0xf] }
 0x1ae   : > { %3448 = vmatprep.mubr.msk.bf16.mxu0 %vm1245_vm7, %v3096_v32  ;;  %3481 = vmatpush3.bf16.msra.mxu1 %v3696_v26  ;;  %v1791_v57 = vrot.slane %v1790_v5, 4  ;;  %v1823_v55 = vrot.slane %v1821_v11, 4  ;;  %v1800_v63 = vor.u32 %v1799_v1, %v1795_v59  ;;  %v3112_v15 = vrot.slane %v3108_v56, 9  ;;  %v4577_v5 = vld [vmem:[%s4329_s6 + $0x34] sm:$0xf]  ;;  %v3698_v6 = vld [vmem:[%s4329_s6 + $0x18] sm:$0xff]  }
 0x1af   : > { %3482 = vmatprep.subr.bf16.mxu1 %v3697_v47  ;;  %v1829_v2 = vrot.slane %v1827_v61, 5  ;;  %v1977_v16 = vrot.slane %v3091_v46, 5  ;;  %v1814_v18 = vor.u32 %v1813_v45, %v1810_v14  ;;  %v1980_v37 = vrot.slane %v4499_v33, 5  ;;  %v4548_v46 = vld [vmem:[%s4329_s6 + $0x20] sm:$0x1] }
 0x1b0   : > { %v1796_v17 = vsel %vm4356_vm8, %v1791_v57, %v1795_v59  ;;  %v1824_v19 = vor.u32 %v1823_v55, %v1819_v50  ;;  %v1801_v22 = vrot.slane %v1800_v63, 4  ;;  %v3113_v28 = vrot.slane %v3109_v12, 9 }
 0x1b1   : > { %v1978_v24 = vsel %vm4412_vm11, %v3112_v15, %v1977_v16  ;;  %v1979_v26 = vrot.slane %v1977_v16, 4  ;;  %v1815_v29 = vrot.slane %v1814_v18, 4  ;;  %v1984_v31 = vrot.slane %v4509_v39, 5 }
 0x1b2   : > { %3483 = vmatpush3.bf16.msra.mxu1 %v3697_v47  ;;  %v1825_v54 = vrot.slane %v1824_v19, 4  ;;  %v1987_v32 = vrot.slane %v4512_v40, 5  ;;  %v1806_v25 = vsel %vm4356_vm8, %v1801_v22, %v1805_v9  ;;  %v2250_v33 = vshrl.u32 %v3144_v20, 16  ;;  %v3153_v19 = vld [vmem:[%s4329_s6 + $0x3c] sm:$0xf] }
 0x1b3   : > { %v1981_v38 = vsel %vm4412_vm11, %v1979_v26, %v1980_v37  ;;  %v2253_v7 = vshll.u32 %v3144_v20, 16  ;;  %v3098_v35 = vcombine.low %v1796_v17, %v1806_v25  ;;  %v1820_v36 = vsel %vm4356_vm8, %v1815_v29, %v1819_v50  ;;  %v4585_v50 = vld [vmem:[%s4329_s6 + $0x38] sm:$0x1] }
 0x1b4   : > { %v1830_v21 = vsel %vm4356_vm8, %v1825_v54, %v1829_v2  ;;  %v3116_v58 = vcombine.low %v1978_v24, %v1981_v38  ;;  %v1985_v39 = vsel %vm4412_vm11, %v3113_v28, %v1984_v31  ;;  %v1986_v40 = vrot.slane %v1984_v31, 4  ;;  %v4598_v54 = vld [vmem:[%s4329_s6 + $0x40] sm:$0xf]  ;;  %v4601_v31 = vld [vmem:[%s4329_s6 + $0x44] sm:$0x1] }
 0x1b5   : > { %3449 = vmatmul.mubr.msk.bf16.vlgmr.msra.gmra.mxu0 %vm1245_vm7, %v3097_v49  ;;  %v3099_v27 = vcombine.low %v1820_v36, %v1830_v21  ;;  %v2252_v41 = vrot.slane %v2250_v33, 4  ;;  %v2255_v43 = vrot.slane %v2253_v7, 5  ;;  %v2259_v44 = vshll.u32 %v4541_v62, 16 }
 0x1b6   : > { %3469 = vmatpush3.bf16.msra.mxu0 %v4493_v30  ;;  %3452 = vmatprep.mubr.msk.bf16.mxu0 %vm1245_vm7, %v3098_v35  ;;  %v2263_v47 = vshrl.u32 %v4541_v62, 16  ;;  %v2269_v30 = vshll.u32 %v4548_v46, 16  ;;  %v1988_v49 = vsel %vm4412_vm11, %v1986_v40, %v1987_v32  ;;  %v2274_v51 = vshrl.u32 %v3147_v34, 16  ;;  %v3700_v32 = vld [vmem:[%s4329_s6 + $0x24] sm:$0xff]  }
 0x1b7   : > { %3470 = vmatprep.subr.bf16.mxu0 %v3695_v23  ;;  %3464 = vmatprep.mubr.msk.bf16.mxu1 %vm1245_vm7, %v3116_v58  ;;  %v2277_v52 = vshll.u32 %v3147_v34, 16  ;;  %v2283_v53 = vshll.u32 %v4559_v8, 16  ;;  %v3117_v56 = vcombine.low %v1985_v39, %v1988_v49  ;;  %v2256_v59 = vor.u32 %v2255_v43, %v2252_v41  ;;  %v3166_v34 = vld [vmem:[%s4329_s6 + $0x18] sm:$0xe] }
 0x1b8   : > { %v2261_v60 = vrot.slane %v2259_v44, 5  ;;  %v2265_v3 = vrot.slane %v2263_v47, 4  ;;  %v2271_v10 = vrot.slane %v2269_v30, 5  ;;  %v2276_v11 = vrot.slane %v2274_v51, 4  ;;  %v3701_v44 = vld [vmem:[%s4329_s6 + $0x30] sm:$0xff]   ;;  %v3702_v47 = vld [vmem:[#allocation6 + $0x80] sm:$0xff]  }
 0x1b9   : > { %v2279_v12 = vrot.slane %v2277_v52, 5  ;;  %v2285_v1 = vrot.slane %v2283_v53, 5  ;;  %3465 = vmatmul.mubr.msk.bf16.gmra.mxu1 %vm1245_vm7, %v3117_v56  ;;  %v2257_v9 = vrot.slane %v2256_v59, 4  ;;  %v2287_v61 = vshrl.u32 %v4559_v8, 16 }
 0x1ba   : > { %3471 = vmatpush3.bf16.msra.mxu0 %v3695_v23  ;;  %v2266_v14 = vor.u32 %v2265_v3, %v2261_v60  ;;  %v2293_v57 = vshll.u32 %v4565_v42, 16  ;;  %v2298_v55 = vshrl.u32 %v3150_v4, 16  ;;  %v2301_v63 = vshll.u32 %v3150_v4, 16 }
 0x1bb   : > { %3492 = vmatprep.subr.bf16.mxu0 %v4556_v13  ;;  %v2280_v45 = vor.u32 %v2279_v12, %v2276_v11  ;;  %v2307_v2 = vshll.u32 %v4577_v5, 16  ;;  %v2262_v15 = vsel %vm4356_vm8, %v2257_v9, %v2261_v60  ;;  %v2289_v17 = vrot.slane %v2287_v61, 4 }
 0x1bc   : > { %v2267_v16 = vrot.slane %v2266_v14, 4  ;;  %v2295_v18 = vrot.slane %v2293_v57, 5  ;;  %v2300_v20 = vrot.slane %v2298_v55, 4  ;;  %v2303_v22 = vrot.slane %v2301_v63, 5  ;;  %v3168_v63 = vld [vmem:[%s4329_s6 + $0x30] sm:$0xe] }
 0x1bd   : > { %3453 = vmatmul.mubr.msk.bf16.gmra.mxu0 %vm1245_vm7, %v3099_v27  ;;  %v2281_v37 = vrot.slane %v2280_v45, 4  ;;  %v2309_v23 = vrot.slane %v2307_v2, 5  ;;  %v2290_v26 = vor.u32 %v2289_v17, %v2285_v1  ;;  %v2311_v28 = vshrl.u32 %v4577_v5, 16 }
 0x1be   : > { %3472 = vmatprep.mubr.msk.bf16.mxu0 %vm1245_vm7, %v3698_v6  ;;  %v2272_v24 = vsel %vm4356_vm8, %v2267_v16, %v2271_v10  ;;  %v2317_v29 = vshll.u32 %v4585_v50, 16  ;;  %v2304_v33 = vor.u32 %v2303_v22, %v2300_v20  ;;  %v2322_v7 = vshrl.u32 %v3153_v19, 16 }
 0x1bf   : > { %v3156_v25 = vcombine.low %v2262_v15, %v2272_v24  ;;  %v2286_v38 = vsel %vm4356_vm8, %v2281_v37, %v2285_v1  ;;  %v2291_v35 = vrot.slane %v2290_v26, 4  ;;  %v2313_v36 = vrot.slane %v2311_v28, 4  ;;  %v3167_v1 = vld [vmem:[%s4329_s6 + $0x24] sm:$0xe]  ;;  %v3169_v26 = vld [vmem:[%s4329_s6 + $0x3c] sm:$0xe] }
 0x1c0   : > { %v2319_v21 = vrot.slane %v2317_v29, 5  ;;  %v2325_v58 = vshll.u32 %v3153_v19, 16  ;;  %v2305_v27 = vrot.slane %v2304_v33, 4  ;;  %v2324_v39 = vrot.slane %v2322_v7, 4 }
 0x1c1   : > { %3484 = vmatprep.mubr.msk.bf16.mxu1 %vm1245_vm7, %v3156_v25  ;;  %v2331_v40 = vshll.u32 %v4598_v54, 16  ;;  %v2335_v41 = vshrl.u32 %v4598_v54, 16  ;;  %v2296_v43 = vsel %vm4356_vm8, %v2291_v35, %v2295_v18  ;;  %v2314_v30 = vor.u32 %v2313_v36, %v2309_v23 }
 0x1c2   : > { %v2327_v49 = vrot.slane %v2325_v58, 5  ;;  %v2341_v51 = vshll.u32 %v4601_v31, 16  ;;  %v3157_v52 = vcombine.low %v2286_v38, %v2296_v43  ;;  %v2310_v59 = vsel %vm4356_vm8, %v2305_v27, %v2309_v23 }
 0x1c3   : > { %v2333_v53 = vrot.slane %v2331_v40, 5  ;;  %v2337_v56 = vrot.slane %v2335_v41, 4  ;;  %v2315_v60 = vrot.slane %v2314_v30, 4  ;;  %v3170_v4 = vrot.slane %v3166_v34, 9  ;;  %v3704_v34 = vld [vmem:[%s4782_s3 + $0x8] sm:$0xff]  }
 0x1c4   : > { %v2328_v3 = vor.u32 %v2327_v49, %v2324_v39  ;;  %3485 = vmatmul.mubr.msk.bf16.vlgmr.msra.gmra.mxu1 %vm1245_vm7, %v3157_v52  ;;  %v2343_v10 = vrot.slane %v2341_v51, 5  ;;  %v2477_v11 = vrot.slane %v4541_v62, 5  ;;  %v2480_v12 = vrot.slane %v4548_v46, 5  ;;  %v3703_v62 = vld [vmem:[%s4329_s6 + $0x3c] sm:$0xff]   ;;  %3504 = vmatprep.subr.bf16.mxu1 %v3704_v34  ;;  %s2832_s6 = sshll.u32 %s4083_s11, 4  ;;  %s4713_s6 = int_to_ptr.vmem [resolvable:$true] %s2832_s6 }
 0x1c5   : > { %3473 = vmatmul.mubr.msk.bf16.vlgmr.msra.gmra.mxu0 %vm1245_vm7, %v3700_v32  ;;  %v2338_v6 = vor.u32 %v2337_v56, %v2333_v53  ;;  %v2320_v9 = vsel %vm4356_vm8, %v2315_v60, %v2319_v21  ;;  %v3171_v2 = vrot.slane %v3167_v1, 9  ;;  %v2487_v15 = vrot.slane %v4565_v42, 5  ;;  %3505 = vmatpush3.bf16.msra.mxu1 %v3704_v34  ;;  %s3760_s12 = scalar_lea.vmem %s4713_s6, 512 }
 0x1c6   : > { %3493 = vmatpush3.bf16.msra.mxu0 %v4556_v13  ;;  %3476 = vmatprep.mubr.msk.bf16.mxu0 %vm1245_vm7, %v3701_v44  ;;  %v2329_v14 = vrot.slane %v2328_v3, 4  ;;  %v2484_v13 = vrot.slane %v4559_v8, 5  ;;  %v3158_v61 = vcombine.low %v2310_v59, %v2320_v9  ;;  %v2478_v45 = vsel %vm4412_vm11, %v3170_v4, %v2477_v11  ;;  %p3761_p1 = scmp.ne.s32.totalorder %s4713_s6, %s3760_s12 }
 0x1c7   : > { %3494 = vmatprep.subr.bf16.mxu0 %v3702_v47  ;;  %v2339_v57 = vrot.slane %v2338_v6, 4  ;;  %v2479_v55 = vrot.slane %v2477_v11, 4  ;;  %v2491_v18 = vrot.slane %v4577_v5, 5  ;;  %v3172_v20 = vrot.slane %v3168_v63, 9 }
 0x1c8   : > { %v2334_v46 = vsel %vm4356_vm8, %v2329_v14, %v2333_v53  ;;  %3488 = vmatprep.mubr.msk.bf16.mxu1 %vm1245_vm7, %v3158_v61  ;;  %v2486_v17 = vrot.slane %v2484_v13, 4  ;;  %v2494_v22 = vrot.slane %v4585_v50, 5  ;;  %v2485_v0 = vsel %vm4412_vm11, %v3171_v2, %v2484_v13  ;;  %p3762_p0 = pnand %p3761_p1, %p4834_p3 }
 0x1c9   : > { %v2344_v8 = vsel %vm4356_vm8, %v2339_v57, %v2343_v10  ;;  %v2481_v16 = vsel %vm4412_vm11, %v2479_v55, %v2480_v12  ;;  %v2493_v23 = vrot.slane %v2491_v18, 4  ;;  %v2498_v5 = vrot.slane %v4598_v54, 5 }
 0x1ca   : > { %3495 = vmatpush3.bf16.msra.mxu0 %v3702_v47  ;;  %v3159_v19 = vcombine.low %v2334_v46, %v2344_v8  ;;  %v3174_v37 = vcombine.low %v2478_v45, %v2481_v16  ;;  %v2488_v42 = vsel %vm4412_vm11, %v2486_v17, %v2487_v15  ;;  %v2492_v24 = vsel %vm4412_vm11, %v3172_v20, %v2491_v18  ;;  %p3763_p13 = pneg %p3762_p0 }
 0x1cb   : > { %v2495_v50 = vsel %vm4412_vm11, %v2493_v23, %v2494_v22  ;;  %v3175_v28 = vcombine.low %v2485_v0, %v2488_v42  ;;  %v3173_v32 = vrot.slane %v3169_v26, 9  ;;  %v2500_v25 = vrot.slane %v2498_v5, 4 }
 0x1cc   : > { %3489 = vmatmul.mubr.msk.bf16.gmra.mxu1 %vm1245_vm7, %v3159_v19  ;;  %v3176_v29 = vcombine.low %v2492_v24, %v2495_v50  ;;  %v2501_v38 = vrot.slane %v4601_v31, 5  ;;  %v3705_v31 = vld [vmem:[%s4782_s3] sm:$0xff]  }
 0x1cd   : > { %3477 = vmatmul.mubr.msk.bf16.gmra.mxu0 %vm1245_vm7, %v3703_v62  ;;  %v2499_v54 = vsel %vm4412_vm11, %v3173_v32, %v2498_v5  ;;  %3506 = vmatprep.subr.bf16.mxu1 %v3705_v31 }
 0x1ce   : > { %3496 = vmatprep.mubr.msk.bf16.mxu0 %vm1245_vm7, %v3174_v37  ;;  %v2502_v33 = vsel %vm4412_vm11, %v2500_v25, %v2501_v38  ;;  %3507 = vmatpush3.bf16.msra.mxu1 %v3705_v31 }
 0x1cf   : > { %v3177_v7 = vcombine.low %v2499_v54, %v2502_v33 }
 0x1d5   : > { %3497 = vmatmul.mubr.msk.bf16.vlgmr.msra.gmra.mxu0 %vm1245_vm7, %v3175_v28 }
 0x1d6   : > { %3500 = vmatprep.mubr.msk.bf16.mxu0 %vm1245_vm7, %v3176_v29 }
 0x1dd   : > { %3501 = vmatmul.mubr.msk.bf16.gmra.mxu0 %vm1245_vm7, %v3177_v7 }
 0x24d   : > { %v3414_v35 = vpop.f32.mrf.mxu1 }
 0x24f   : > { %v1401_v36 = vpop.f32.mrf.mxu1 }
 0x251   : > { %v3415_v21 = vpop.f32.mrf.mxu1 }
 0x253   : > { %v3402_v48 = vpop.f32.mrf.mxu0  ;;  %v1404_v58 = vpop.f32.mrf.mxu1 }
 0x254   : > { %v1410_v42 = vadd.f32 %v3414_v35, %v3402_v48 }
 0x255   : > { %v1292_v27 = vpop.f32.mrf.mxu0  ;;  %v3418_v39 = vpop.f32.mrf.mxu1 }
 0x256   : > { %v1402_v0 = vadd.f32 %v1401_v36, %v1292_v27 }
 0x257   : > { %v3403_v40 = vpop.f32.mrf.mxu0  ;;  %v1417_v41 = vpop.f32.mrf.mxu1 }
 0x258   : > { %v1413_v24 = vadd.f32 %v3415_v21, %v3403_v40 }
 0x259   : > { %v1295_v43 = vpop.f32.mrf.mxu0  ;;  %v3419_v44 = vpop.f32.mrf.mxu1 }
 0x25a   : > { %v1405_v32 = vadd.f32 %v1404_v58, %v1295_v43 }
 0x25b   : > { %v4667_v47 = vpop.f32.mrf.mxu1 }
 0x25d   : > { %v3406_v30 = vpop.f32.mrf.mxu0  ;;  %v3438_v49 = vpop.f32.mrf.mxu1 }
 0x25e   : > { %v1426_v36 = vadd.f32 %v3418_v39, %v3406_v30 }
 0x25f   : > { %v1308_v51 = vpop.f32.mrf.mxu0  ;;  %v1684_v52 = vpop.f32.mrf.mxu1 }
 0x261   : > { %v3407_v53 = vpop.f32.mrf.mxu0  ;;  %v3439_v56 = vpop.f32.mrf.mxu1 }
 0x262   : > { %v1429_v21 = vadd.f32 %v3419_v44, %v3407_v53 }
 0x263   : > { %v1311_v59 = vpop.f32.mrf.mxu0  ;;  %v1687_v60 = vpop.f32.mrf.mxu1 }
 0x264   : > { %v1421_v58 = vadd.f32 %v4667_v47, %v1311_v59 }
 0x265   : > { %v3426_v3 = vpop.f32.mrf.mxu0  ;;  %v4669_v4 = vpop.f32.mrf.mxu1 }
 0x266   : > { %v1583_v28 = vadd.f32 %v3426_v3, %v1410_v42 }
 0x267   : > { %v1550_v6 = vpop.f32.mrf.mxu0  ;;  %v1700_v10 = vpop.f32.mrf.mxu1 }
 0x268   : > { %v1581_v50 = vadd.f32 %v1550_v6, %v1402_v0  ;;  %v1717_v34 = vadd.f32 %v3438_v49, %v1583_v28 }
 0x269   : > { %v3427_v11 = vpop.f32.mrf.mxu0  ;;  %v4671_v12 = vpop.f32.mrf.mxu1 }
 0x26a   : > { %v1584_v25 = vadd.f32 %v3427_v11, %v1413_v24  ;;  %v1715_v33 = vadd.f32 %v1684_v52, %v1581_v50 }
 0x26b   : > { %v1553_v1 = vpop.f32.mrf.mxu0  ;;  %v4673_v9 = vpop.f32.mrf.mxu1 }
 0x26c   : > { %v1582_v7 = vadd.f32 %v1553_v1, %v1405_v32 }
 0x26d   : > { %v3430_v14 = vpop.f32.mrf.mxu0  ;;  %v3462_v13 = vpop.f32.mrf.mxu1 }
 0x26e   : > { %v1716_v27 = vadd.f32 %v1687_v60, %v1582_v7  ;;  %v1587_v43 = vadd.f32 %v3430_v14, %v1426_v36 }
 0x26f   : > { %v1566_v61 = vpop.f32.mrf.mxu0  ;;  %v2064_v57 = vpop.f32.mrf.mxu1 }
 0x270   : > { %v1721_v30 = vadd.f32 %v4669_v4, %v1587_v43 }
 0x271   : > { %v3431_v45 = vpop.f32.mrf.mxu0  ;;  %v3463_v63 = vpop.f32.mrf.mxu1 }
 0x272   : > { %v1588_v52 = vadd.f32 %v3431_v45, %v1429_v21 }
 0x273   : > { %v1569_v55 = vpop.f32.mrf.mxu0  ;;  %v2067_v2 = vpop.f32.mrf.mxu1 }
 0x274   : > { %v1586_v0 = vadd.f32 %v1569_v55, %v1421_v58 }
 0x275   : > { %v3450_v62 = vpop.f32.mrf.mxu0 }
 0x276   : > { %v1939_v35 = vadd.f32 %v3450_v62, %v1717_v34  ;;  %v1720_v45 = vadd.f32 %v4673_v9, %v1586_v0 }
 0x277   : > { %v1906_v46 = vpop.f32.mrf.mxu0 }
 0x278   : > { %v2097_v42 = vadd.f32 %v3462_v13, %v1939_v35 }
 0x279   : > { %v3451_v15 = vpop.f32.mrf.mxu0  ;;  %v4675_v16 = vpop.f32.mrf.mxu1 }
 0x27a   : > { %4822 = vst [vmem:[#allocation19_spill] sm:$0xff] %v4675_v16  ;;  %v1418_v16 = vadd.f32 %v1417_v41, %v1308_v51 }
 0x27b   : > { %v1909_v8 = vpop.f32.mrf.mxu0  ;;  %v4677_v18 = vpop.f32.mrf.mxu1 }
 0x27c   : > { %4823 = vst [vmem:[#allocation20_spill] sm:$0xff] %v4677_v18  ;;  %v1937_v18 = vadd.f32 %v1906_v46, %v1715_v33  ;;  %v1585_v40 = vadd.f32 %v1566_v61, %v1418_v16  ;;  %v1938_v49 = vadd.f32 %v1909_v8, %v1716_v27  ;;  %v1722_v61 = vadd.f32 %v4671_v12, %v1588_v52 }
 0x27d   : > { %v3454_v17 = vpop.f32.mrf.mxu0  ;;  %v4679_v37 = vpop.f32.mrf.mxu1 }
 0x27e   : > { %4824 = vst [vmem:[#allocation21_spill] sm:$0xff] %v4679_v37  ;;  %v2095_v1 = vadd.f32 %v2064_v57, %v1937_v18  ;;  %v1719_v51 = vadd.f32 %v1700_v10, %v1585_v40  ;;  %v2096_v47 = vadd.f32 %v2067_v2, %v1938_v49  ;;  %v1943_v57 = vadd.f32 %v3454_v17, %v1721_v30 }
 0x27f   : > { %v1922_v19 = vpop.f32.mrf.mxu0  ;;  %v4681_v22 = vpop.f32.mrf.mxu1 }
 0x280   : > { %4825 = vst [vmem:[#allocation22_spill] sm:$0xff] %v4681_v22  ;;  %v1718_v22 = vadd.f32 %v3439_v56, %v1584_v25  ;;  %v1941_v59 = vadd.f32 %v1922_v19, %v1719_v51 }
 0x281   : > { %v3455_v20 = vpop.f32.mrf.mxu0 }
 0x282   : > { %v1940_v3 = vadd.f32 %v3451_v15, %v1718_v22  ;;  %v1944_v55 = vadd.f32 %v3455_v20, %v1722_v61  ;;  %v3184_v20 = vld [vmem:[%s4783_s4 + $0x1] ss:$0 sm:$0xff] }
 0x283   : > { %v1925_v23 = vpop.f32.mrf.mxu0  ;;  %v4826_v4 = vld [vmem:[#allocation20_spill] sm:$0xff] }
 0x284   : > { %v3486_v26 = vpop.f32.mrf.mxu1  ;;  %v2098_v56 = vadd.f32 %v3463_v63, %v1940_v3  ;;  %v1942_v10 = vadd.f32 %v1925_v23, %v1720_v45  ;;  %v2099_v16 = vadd.f32 %v4826_v4, %v1941_v59 }
 0x285   : > { %v3474_v5 = vpop.f32.mrf.mxu0  ;;  %v4828_v24 = vld [vmem:[#allocation21_spill] sm:$0xff] }
 0x286   : > { %v2420_v38 = vpop.f32.mrf.mxu1  ;;  %v2231_v44 = vadd.f32 %v3474_v5, %v2097_v42  ;;  %v4827_v5 = vld [vmem:[#allocation19_spill] sm:$0xff]  ;;  %v2102_v50 = vadd.f32 %v4828_v24, %v1944_v55 }
 0x287   : > { %v2198_v29 = vpop.f32.mrf.mxu0  ;;  %v2101_v12 = vadd.f32 %v4827_v5, %v1943_v57  ;;  %v3258_v57 = vld [vmem:[%s2648_s14 + $0x8] sm:$0xff]  }
 0x288   : > { %v3487_v37 = vpop.f32.mrf.mxu1  ;;  %v2229_v39 = vadd.f32 %v2198_v29, %v2095_v1  ;;  %v2453_v63 = vadd.f32 %v3486_v26, %v2231_v44  ;;  %v4829_v26 = vld [vmem:[#allocation22_spill] sm:$0xff]  ;;  %v3229_v4 = vunpack.c.h.bf16 %v3258_v57 }
 0x289   : > { %v3475_v54 = vpop.f32.mrf.mxu0  ;;  %v2100_v28 = vadd.f32 %v4829_v26, %v1942_v10 }
 0x28a   : > { %v2423_v6 = vpop.f32.mrf.mxu1  ;;  %v2232_v14 = vadd.f32 %v3475_v54, %v2098_v56  ;;  %v2451_v13 = vadd.f32 %v2420_v38, %v2229_v39 }
 0x28b   : > { %v2201_v31 = vpop.f32.mrf.mxu0 }
 0x28c   : > { %v3490_v53 = vpop.f32.mrf.mxu1  ;;  %v2230_v46 = vadd.f32 %v2201_v31, %v2096_v47  ;;  %v2454_v18 = vadd.f32 %v3487_v37, %v2232_v14 }
 0x28d   : > { %v3478_v48 = vpop.f32.mrf.mxu0 }
 0x28e   : > { %v2436_v15 = vpop.f32.mrf.mxu1  ;;  %v2452_v9 = vadd.f32 %v2423_v6, %v2230_v46  ;;  %v2235_v29 = vadd.f32 %v3478_v48, %v2101_v12  ;;  %v3228_v46 = vunpack.c.l.bf16 %v3258_v57  ;;  %v3260_v12 = vld [vmem:[%s2648_s14 + $0x18] sm:$0xff]  }
 0x28f   : > { %v2214_v11 = vpop.f32.mrf.mxu0 }
 0x290   : > { %v2233_v17 = vadd.f32 %v2214_v11, %v2099_v16  ;;  %v3491_v32 = vpop.f32.mrf.mxu1  ;;  %v2457_v21 = vadd.f32 %v3490_v53, %v2235_v29 }
 0x291   : > { %v3479_v41 = vpop.f32.mrf.mxu0 }
 0x292   : > { %v2236_v37 = vadd.f32 %v3479_v41, %v2102_v50  ;;  %v2455_v31 = vadd.f32 %v2436_v15, %v2233_v17  ;;  %v2439_v27 = vpop.f32.mrf.mxu1  ;;  %v3236_v17 = vunpack.c.l.bf16 %v3260_v12 }
 0x293   : > { %v2217_v60 = vpop.f32.mrf.mxu0 }
 0x294   : > { %v2234_v36 = vadd.f32 %v2217_v60, %v2100_v28  ;;  %v2458_v58 = vadd.f32 %v3491_v32, %v2236_v37  ;;  %v3237_v37 = vunpack.c.h.bf16 %v3260_v12 }
 0x295   : > { %v3498_v62 = vpop.f32.mrf.mxu0 }
 0x296   : > { %v2611_v2 = vadd.f32 %v3498_v62, %v2453_v63  ;;  %v2456_v49 = vadd.f32 %v2439_v27, %v2234_v36  ;;  %v3187_v62 = vld [vmem:[%s4783_s4 + $0x2] ss:$0 sm:$0xff] }
 0x297   : > { %v2578_v8 = vpop.f32.mrf.mxu0 }
 0x298   : > { %v2609_v22 = vadd.f32 %v2578_v8, %v2451_v13  ;;  %v2624_v7 = vadd.f32 %v3184_v20, %v2611_v2  ;;  %v3223_v13 = vld [vmem:[%s2648_s14] sm:$0xff]  }
 0x299   : > { %v3499_v19 = vpop.f32.mrf.mxu0  ;;  %v3224_v15 = vunpack.c.l.bf16 %v3223_v13  ;;  %v3225_v5 = vunpack.c.h.bf16 %v3223_v13 }
 0x29a   : > { %v2612_v23 = vadd.f32 %v3499_v19, %v2454_v18  ;;  %v2622_v38 = vadd.f32 %v3184_v20, %v2609_v22  ;;  %v2632_v48 = vmax.f32 %v2624_v7, 0.0 }
 0x29b   : > { %v2581_v25 = vpop.f32.mrf.mxu0 }
 0x29c   : > { %v2625_v54 = vadd.f32 %v3184_v20, %v2612_v23  ;;  %v2610_v33 = vadd.f32 %v2581_v25, %v2452_v9  ;;  %v2630_v43 = vmax.f32 %v2622_v38, 0.0  ;;  %v3259_v9 = vld [vmem:[%s2648_s14 + $0x10] sm:$0xff]   ;;  %s3891_s14 = smov [#allocation8]  }
 0x29d   : > { %v3502_v34 = vpop.f32.mrf.mxu0  ;;  %v3232_v32 = vunpack.c.l.bf16 %v3259_v9  ;;  %s3764_s13 = sshll.u32 %s3891_s14, 4  ;;  %s3765_s13 = int_to_ptr.vmem [resolvable:$false] %s3764_s13 }
 0x29e   : > { %v2623_v35 = vadd.f32 %v3184_v20, %v2610_v33  ;;  %v2633_v40 = vmax.f32 %v2625_v54, 0.0  ;;  %v2615_v52 = vadd.f32 %v3502_v34, %v2457_v21  ;;  %v3233_v21 = vunpack.c.h.bf16 %v3259_v9  ;;  %s3766_s25 = scalar_lea.vmem %s3765_s13, 1024  ;;  %p3767_p5 = scmp.lt.s32.totalorder %s4713_s6, %s3765_s13 }
 0x29f   : > { %v2594_v3 = vpop.f32.mrf.mxu0  ;;  %p3768_p6 = scmp.lt.s32.totalorder %s3766_s25, %s3760_s12 }
 0x2a0   : > { %v2631_v6 = vmax.f32 %v2623_v35, 0.0  ;;  %v2613_v11 = vadd.f32 %v2594_v3, %v2455_v31  ;;  %v2639_v41 = vpack.c.bf16 %v2633_v40, %v2632_v48  ;;  %v2628_v44 = vadd.f32 %v3184_v20, %v2615_v52 }
 0x2a1   : > { %v3503_v1 = vpop.f32.mrf.mxu0  ;;  %p3769_p8 = por %p3768_p6, %p3767_p5 }
 0x2a2   : > { %v2638_v0 = vpack.c.bf16 %v2631_v6, %v2630_v43  ;;  %v2616_v42 = vadd.f32 %v3503_v1, %v2458_v58  ;;  %v2626_v56 = vadd.f32 %v3184_v20, %v2613_v11  ;;  %v2636_v59 = vmax.f32 %v2628_v44, 0.0 }
 0x2a3   : > { %v2597_v51 = vpop.f32.mrf.mxu0  ;;  %p3770_p7 = pnand %p3769_p8, %p3763_p13 }
 0x2a4   : > { %v2629_v39 = vadd.f32 %v3184_v20, %v2616_v42  ;;  %v2614_v30 = vadd.f32 %v2597_v51, %v2456_v49  ;;  %3508 = vmatprep.mubr.msk.bf16.mxu1 %vm1245_vm7, %v2638_v0  ;;  %v2634_v61 = vmax.f32 %v2626_v56, 0.0 }
 0x2a5   : > { %3509 = vmatmul.mubr.msk.bf16.vlgmr.msra.gmra.mxu1 %vm1245_vm7, %v2639_v41 }
 0x2a6   : > { %v2627_v53 = vadd.f32 %v3184_v20, %v2614_v30  ;;  %v2637_v60 = vmax.f32 %v2629_v39, 0.0 }
 0x2a8   : > { %v2635_v47 = vmax.f32 %v2627_v53, 0.0  ;;  %v2641_v45 = vpack.c.bf16 %v2637_v60, %v2636_v59 }
 0x2aa   : > { %v2640_v14 = vpack.c.bf16 %v2635_v47, %v2634_v61 }
 0x2ac   : > { %3512 = vmatprep.mubr.msk.bf16.mxu1 %vm1245_vm7, %v2640_v14 }
 0x2ad   : > { %3513 = vmatmul.mubr.msk.bf16.gmra.mxu1 %vm1245_vm7, %v2641_v45 }
 0x365   : > { %v3510_v55 = vpop.f32.mrf.mxu1 }
 0x366   : > { %v2737_v10 = vadd.f32 %v3510_v55, %v3187_v62 }
 0x367   : > { %v2728_v63 = vpop.f32.mrf.mxu1 }
 0x368   : > { %v2729_v8 = vadd.f32 %v3187_v62, %v2728_v63  ;;  %v2761_v18 = vadd.f32 %v3228_v46, %v2737_v10 }
 0x369   : > { %v3511_v16 = vpop.f32.mrf.mxu1 }
 0x36a   : > { %v2740_v22 = vadd.f32 %v3511_v16, %v3187_v62  ;;  %v2759_v19 = vadd.f32 %v3224_v15, %v2729_v8  ;;  %v2769_v23 = vmax.f32 %v2761_v18, 0.0 }
 0x36b   : > { %v2731_v2 = vpop.f32.mrf.mxu1 }
 0x36c   : > { %v2762_v24 = vadd.f32 %v3229_v4, %v2740_v22  ;;  %v2732_v50 = vadd.f32 %v3187_v62, %v2731_v2  ;;  %v2767_v38 = vmax.f32 %v2759_v19, 0.0 }
 0x36d   : > { %v3514_v20 = vpop.f32.mrf.mxu1 }
 0x36e   : > { %v2770_v26 = vmax.f32 %v2762_v24, 0.0  ;;  %v2760_v28 = vadd.f32 %v3225_v5, %v2732_v50  ;;  %v2753_v29 = vadd.f32 %v3514_v20, %v3187_v62 }
 0x36f   : > { %v2744_v25 = vpop.f32.mrf.mxu1 }
 0x370   : > { %v3246_v54 = vpack.c.bf16 %v2770_v26, %v2769_v23  ;;  %v2768_v33 = vmax.f32 %v2760_v28, 0.0  ;;  %v2745_v7 = vadd.f32 %v3187_v62, %v2744_v25  ;;  %v2765_v36 = vadd.f32 %v3236_v17, %v2753_v29 }
 0x371   : > { %v3515_v34 = vpop.f32.mrf.mxu1 }
 0x372   : > { %3261 = vst [vmem:[%s4083_s11 + $0x8] sm:$0xff] %v3246_v54   ;;  %v3241_v31 = vpack.c.bf16 %v2768_v33, %v2767_v38  ;;  %v2756_v35 = vadd.f32 %v3515_v34, %v3187_v62  ;;  %v2763_v40 = vadd.f32 %v3232_v32, %v2745_v7  ;;  %v2773_v43 = vmax.f32 %v2765_v36, 0.0 }
 0x373   : > { %v2747_v27 = vpop.f32.mrf.mxu1 }
 0x374   : > { %3242 = vst [vmem:[%s4083_s11] sm:$0xff] %v3241_v31   ;;  %v2766_v3 = vadd.f32 %v3237_v37, %v2756_v35  ;;  %v2748_v58 = vadd.f32 %v3187_v62, %v2747_v27  ;;  %v2771_v48 = vmax.f32 %v2763_v40, 0.0 }
 0x376   : > { %v2774_v6 = vmax.f32 %v2766_v3, 0.0  ;;  %v2764_v11 = vadd.f32 %v3233_v21, %v2748_v58 }
 0x378   : > { %v3256_v52 = vpack.c.bf16 %v2774_v6, %v2773_v43  ;;  %v2772_v1 = vmax.f32 %v2764_v11, 0.0 }
 0x37a   : > { %3263 = vst [vmem:[%s4083_s11 + $0x18] sm:$0xff] %v3256_v52   ;;  %v3251_v49 = vpack.c.bf16 %v2772_v1, %v2771_v48 }
 0x37c   : > { %3262 = vst [vmem:[%s4083_s11 + $0x10] sm:$0xff] %v3251_v49  }
 0x37d   : > { %3773 = shalt.err (!%p3770_p7)
}
 0x37e   : > { %s3774_s5 = scalar_lea.hbm %s4711_s9, 512  ;;  %s3778_s30 = scalar_lea.hbm %s4833_s7, 4096 }
 0x37f   : > { %p3775_p9 = scmp.ne.s32.totalorder %s4711_s9, %s3774_s5  ;;  %p3779_p2 = scmp.lt.s32.totalorder %s4711_s9, %s4833_s7 }
 0x380   : > { %p3780_p4 = scmp.lt.s32.totalorder %s3778_s30, %s3774_s5 }
 0x381   : > { %p3776_p10 = pnand %p3775_p9, %p4834_p3 }
 0x382   : > { %p3781_p11 = por %p3780_p4, %p3779_p2 }
 0x383   : > { %p3777_p12 = pneg %p3776_p10 }
 0x385   : > { %p3782_p1 = pnand %p3781_p11, %p3777_p12 }
 0x387   : > { %3785 = shalt.err (!%p3782_p1)
}
 0x388   : > { %s3892_s24 = smov 64   ;;  %s3893_s16 = smov 4  }
 0x389   : > { %3538 = dma.vmem_to_hbm [thread:$0]  (%p4834_p3), %s4713_s6, 512, %s4711_s9, %s4719_s10, %s3892_s24, %s3892_s24, %s3893_s16  }
 0x38a PF: > { %s4835_s29 = sld [smem:[#allocation12_spill]]  ;;  %p3555_p0 = scmp.ge.s32.totalorder %s3884_s28, 2 }
 0x38b   : > { %s4836_s18 = sld [smem:[#allocation16_spill]] }
 0x390   : > { %s2847_s12 = sand.u32 1, %s4835_s29  }
 0x391   : > { %p4837_p13 = scmp.ne.s32.totalorder %s4836_s18, 0  ;;  %s2848_s14 = scalar_lea.sflag [#allocation5], %s2847_s12 }
 0x393   : > { %p3549_p5 = pnand %p3555_p0, %p4837_p13 }
 0x395   : > { %p3550_p6 = pneg %p3549_p5 }
 0x397   : > { %3839 = dma.done.wait (%p3550_p6), %s2848_s14, 512  }
 0x398   : > { %3841 = vsyncadd (%p3550_p6), %s2848_s14, 4294966784  ;;  %s22_s28 = sadd.s32 1, %s3884_s28   ;;  %s4838_s24 = sld [smem:[#allocation14_spill]] }
 0x399   : > { %p19_p8 = scmp.ge.s32.totalorder %s22_s28, 10   ;;  %s4839_s15 = sld [smem:[#allocation17_spill]] }
 0x39a   : > { %s4840_s6 = sld [smem:[#allocation18_spill]]  ;;  %s4841_s18 = smov %s3848_s19 }
 0x39b   : > { %s4842_s19 = smov %s3852_s20  ;;  %s4843_s20 = smov %s4047_s26 }
 0x39c   : > { %s4844_s21 = smov %s3860_s22  ;;  %s4845_s22 = smov %s3864_s23 }
 0x39d   : > { %s4846_s23 = smov %s4042_s2  ;;  %s4847_s25 = smov %s3880_s27 }
 0x39e   :  { %21 = sbr.rel (!%p19_p8) target bundleno = 13 (0xd), region = 107 }
 0x39f   : > { %s4848_s26 = smov %s4839_s15 }
 0x3a0   : > { %s4849_s27 = smov %s4840_s6 }
 0x3a3   :  { %2853 = vsyncpa [#allocation4], 1 }
 0x3a4   :  { %2855 = vsyncpa [#allocation4 + $0x1], 1 }
 0x3a5   :  { %2856 = vsyncpa [#allocation7], 1 }
 0x3a6   :  { %2857 = vsyncpa [#allocation5], 1 }
 0x3a7   :  { %2859 = vsyncpa [#allocation5 + $0x1], 1 }

</bundles_post_ra>
